<compile_context>
chip_gen: v7x
topology: tpu7x:2x2x1
jax: 0.10.0
libtpu: 0.0.40
codegen_flags: <defaults>
</compile_context>

<pallas_src>
import jax
import jax.numpy as jnp
from jax.experimental import pallas as pl
from jax.experimental.pallas import tpu as pltpu


def _ae_kernel(x_ref,
               w1_ref, b1_ref, w2_ref, b2_ref, w3_ref, b3_ref,
               w4_ref, b4_ref, w5_ref, b5_ref, w6_ref, b6_ref,
               o_ref):
    """One batch tile of the full autoencoder, entirely in VMEM.

    x_ref : [TM, 896] bf16 (zero-padded 784->896)
    o_ref : [TM, 896] caller dtype
    Weights are bf16 [in_pad, out_pad]; biases are f32 [1, out_pad].
    """
    h = x_ref[...]  # bf16

    def hidden(h, w_ref, b_ref):
        acc = jnp.dot(h, w_ref[...], preferred_element_type=jnp.float32)
        acc = acc + b_ref[...]                  # f32 bias on f32 accumulator
        return jnp.maximum(acc, 0.0).astype(jnp.bfloat16)

    # encoder
    h = hidden(h, w1_ref, b1_ref)
    h = hidden(h, w2_ref, b2_ref)
    h = hidden(h, w3_ref, b3_ref)
    # decoder
    h = hidden(h, w4_ref, b4_ref)
    h = hidden(h, w5_ref, b5_ref)
    acc = jnp.dot(h, w6_ref[...], preferred_element_type=jnp.float32) + b6_ref[...]
    o_ref[...] = jax.nn.sigmoid(acc).astype(o_ref.dtype)


# torch layer dims and their lane-padded (multiple-of-128) counterparts
_TORCH_DIMS = [(784, 256), (256, 64), (64, 20), (20, 64), (64, 256), (256, 784)]
_PAD_DIMS = [(896, 256), (256, 128), (128, 128), (128, 128), (128, 256), (256, 896)]
_D_IN_PAD = 896
_D_OUT_PAD = 896
_MAX_TM = 512   # fits: weights ~1.1MiB + 2x(512x896 bf16 in) + 2x(512x896 f32 out) ~ 8MiB


def _round_up(n, m):
    return (n + m - 1) // m * m


def _pad2d(a, shape):
    return jnp.pad(a, [(0, t - s) for s, t in zip(a.shape, shape)])


def init_params(key, dtype=jnp.float32):
    """Deterministic init. Weights stored as [in, out] (transposed vs torch)."""
    params = []
    for i, (din, dout) in enumerate(_TORCH_DIMS):
        kw, kb, key = jax.random.split(jax.random.fold_in(key, i), 3)
        bound = 1.0 / (din ** 0.5)  # matches torch.nn.Linear default init range
        w = jax.random.uniform(kw, (din, dout), dtype, -bound, bound)
        b = jax.random.uniform(kb, (1, dout), dtype, -bound, bound)
        params += [w, b]
    return params


@jax.jit
def autoencoder_forward(x_nchw, *params):
    """x_nchw: [B, 1, 28, 28] -> [B, 1, 28, 28]"""
    b = x_nchw.shape[0]
    out_dtype = x_nchw.dtype

    # --- wrapper-side layout prep (zero padding is numerically exact) ---
    x = x_nchw.reshape(b, 28 * 28).astype(jnp.bfloat16)
    tm = min(_MAX_TM, _round_up(b, 8))        # MXU-friendly batch tile
    b_pad = _round_up(b, tm)
    x = _pad2d(x, (b_pad, _D_IN_PAD))

    padded_params = []
    for i, (din_p, dout_p) in enumerate(_PAD_DIMS):
        w, bias = params[2 * i], params[2 * i + 1]
        padded_params.append(_pad2d(w.astype(jnp.bfloat16), (din_p, dout_p)))
        padded_params.append(
            _pad2d(bias.reshape(1, -1).astype(jnp.float32), (1, dout_p)))

    grid = (b_pad // tm,)
    x_spec = pl.BlockSpec((tm, _D_IN_PAD), lambda i: (i, 0))
    o_spec = pl.BlockSpec((tm, _D_OUT_PAD), lambda i: (i, 0))

    def resident(p):  # same block every grid step => stays in VMEM, no re-DMA
        return pl.BlockSpec(p.shape, lambda i: (0,) * p.ndim)

    flops = 2 * b_pad * sum(di * do for di, do in _PAD_DIMS)
    bytes_accessed = (
        x.size * x.dtype.itemsize
        + b_pad * _D_OUT_PAD * jnp.dtype(out_dtype).itemsize
        + sum(p.size * p.dtype.itemsize for p in padded_params))
    cost = pl.CostEstimate(flops=flops,
                           transcendentals=b_pad * _D_OUT_PAD,
                           bytes_accessed=bytes_accessed)

    out = pl.pallas_call(
        _ae_kernel,
        out_shape=jax.ShapeDtypeStruct((b_pad, _D_OUT_PAD), out_dtype),
        grid=grid,
        in_specs=[x_spec] + [resident(p) for p in padded_params],
        out_specs=o_spec,
        compiler_params=pltpu.CompilerParams(
            dimension_semantics=("parallel",),   # shard batch tiles across TCs (v7x)
        ),
        cost_estimate=cost,
    )(x, *padded_params)

    return out[:b, :28 * 28].reshape(b, 1, 28, 28)


if __name__ == "__main__":
    key = jax.random.PRNGKey(0)
    kx, kp = jax.random.split(key)

    batch = 8
    x = jax.random.uniform(kx, (batch, 1, 28, 28), jnp.float32)
    params = init_params(kp)

    y = autoencoder_forward(x, *params)
    jax.block_until_ready(y)

    # sanity: shape / dtype / sigmoid range
    assert y.shape == (batch, 1, 28, 28), y.shape
    assert y.dtype == jnp.float32
    assert bool(jnp.all((y >= 0.0) & (y <= 1.0)))

    # correctness vs a plain-JAX reference of the same math
    # (weights & input quantized to bf16 to match the kernel's storage dtype,
    #  compute in f32; remaining diff is only per-layer bf16 activation rounding)
    def ref(xin, ps):
        h = xin.reshape(batch, -1).astype(jnp.bfloat16).astype(jnp.float32)
        for i in range(0, 12, 2):
            w = ps[i].astype(jnp.bfloat16).astype(jnp.float32)
            bb = ps[i + 1].astype(jnp.float32)
            h = h @ w + bb
            h = jax.nn.sigmoid(h) if i == 10 else jnp.maximum(h, 0.0)
        return h.reshape(batch, 1, 28, 28)

    y_ref = ref(x, params)
    assert bool(jnp.allclose(y, y_ref, atol=2e-2)), float(jnp.max(jnp.abs(y - y_ref)))

    print("KERNEL_OK")
</pallas_src>

<mosaic_0001>
module attributes {stable_mosaic.version = 11 : i64} {
  func.func @_ae_kernel(%arg0: i32, %arg1: memref<8x896xbf16, #tpu.memory_space<vmem>>, %arg2: memref<896x256xbf16, #tpu.memory_space<vmem>>, %arg3: memref<1x256xf32, #tpu.memory_space<vmem>>, %arg4: memref<256x128xbf16, #tpu.memory_space<vmem>>, %arg5: memref<1x128xf32, #tpu.memory_space<vmem>>, %arg6: memref<128x128xbf16, #tpu.memory_space<vmem>>, %arg7: memref<1x128xf32, #tpu.memory_space<vmem>>, %arg8: memref<128x128xbf16, #tpu.memory_space<vmem>>, %arg9: memref<1x128xf32, #tpu.memory_space<vmem>>, %arg10: memref<128x256xbf16, #tpu.memory_space<vmem>>, %arg11: memref<1x256xf32, #tpu.memory_space<vmem>>, %arg12: memref<256x896xbf16, #tpu.memory_space<vmem>>, %arg13: memref<1x896xf32, #tpu.memory_space<vmem>>, %arg14: memref<8x896xf32, #tpu.memory_space<vmem>>) attributes {dimension_semantics = [#tpu.dimension_semantics<parallel>], iteration_bounds = array<i64: 1>, scalar_prefetch = 0 : i64, scratch_operands = 0 : i64, tpu.core_type = #tpu.core_type<tc>, window_params = [{transform_indices = @transform_0, window_bounds = array<i64: 8, 896>}, {pipeline_mode = #tpu.pipeline_mode<synchronous>, transform_indices = @transform_1, window_bounds = array<i64: 896, 256>}, {pipeline_mode = #tpu.pipeline_mode<synchronous>, transform_indices = @transform_2, window_bounds = array<i64: 1, 256>}, {pipeline_mode = #tpu.pipeline_mode<synchronous>, transform_indices = @transform_3, window_bounds = array<i64: 256, 128>}, {pipeline_mode = #tpu.pipeline_mode<synchronous>, transform_indices = @transform_4, window_bounds = array<i64: 1, 128>}, {pipeline_mode = #tpu.pipeline_mode<synchronous>, transform_indices = @transform_5, window_bounds = array<i64: 128, 128>}, {pipeline_mode = #tpu.pipeline_mode<synchronous>, transform_indices = @transform_6, window_bounds = array<i64: 1, 128>}, {pipeline_mode = #tpu.pipeline_mode<synchronous>, transform_indices = @transform_7, window_bounds = array<i64: 128, 128>}, {pipeline_mode = #tpu.pipeline_mode<synchronous>, transform_indices = @transform_8, window_bounds = array<i64: 1, 128>}, {pipeline_mode = #tpu.pipeline_mode<synchronous>, transform_indices = @transform_9, window_bounds = array<i64: 128, 256>}, {pipeline_mode = #tpu.pipeline_mode<synchronous>, transform_indices = @transform_10, window_bounds = array<i64: 1, 256>}, {pipeline_mode = #tpu.pipeline_mode<synchronous>, transform_indices = @transform_11, window_bounds = array<i64: 256, 896>}, {pipeline_mode = #tpu.pipeline_mode<synchronous>, transform_indices = @transform_12, window_bounds = array<i64: 1, 896>}, {transform_indices = @transform_13, window_bounds = array<i64: 8, 896>}]} {
    %c0 = arith.constant 0 : index
    %c0_0 = arith.constant 0 : index
    %0 = vector.load %arg1[%c0, %c0_0] : memref<8x896xbf16, #tpu.memory_space<vmem>>, vector<8x896xbf16>
    %c0_1 = arith.constant 0 : index
    %c0_2 = arith.constant 0 : index
    %1 = vector.load %arg2[%c0_1, %c0_2] : memref<896x256xbf16, #tpu.memory_space<vmem>>, vector<896x256xbf16>
    %cst = arith.constant dense<0.000000e+00> : vector<8x256xf32>
    %2 = tpu.matmul %0, %1, %cst {dimension_numbers = #tpu.dot_dimension_numbers<[1], [0], [0], [1], [0, 0, 1, 1], [], []>} : vector<8x896xbf16>, vector<896x256xbf16>, vector<8x256xf32> -> vector<8x256xf32>
    %c0_3 = arith.constant 0 : index
    %c0_4 = arith.constant 0 : index
    %3 = vector.load %arg3[%c0_3, %c0_4] : memref<1x256xf32, #tpu.memory_space<vmem>>, vector<1x256xf32>
    %4 = vector.broadcast %3 : vector<1x256xf32> to vector<8x256xf32>
    %5 = arith.addf %2, %4 : vector<8x256xf32>
    %cst_5 = arith.constant 0.000000e+00 : f32
    %6 = vector.broadcast %cst_5 : f32 to vector<8x256xf32>
    %7 = arith.maximumf %5, %6 : vector<8x256xf32>
    %8 = arith.truncf %7 : vector<8x256xf32> to vector<8x256xbf16>
    %c0_6 = arith.constant 0 : index
    %c0_7 = arith.constant 0 : index
    %9 = vector.load %arg4[%c0_6, %c0_7] : memref<256x128xbf16, #tpu.memory_space<vmem>>, vector<256x128xbf16>
    %cst_8 = arith.constant dense<0.000000e+00> : vector<8x128xf32>
    %10 = tpu.matmul %8, %9, %cst_8 {dimension_numbers = #tpu.dot_dimension_numbers<[1], [0], [0], [1], [0, 0, 1, 1], [], []>} : vector<8x256xbf16>, vector<256x128xbf16>, vector<8x128xf32> -> vector<8x128xf32>
    %c0_9 = arith.constant 0 : index
    %c0_10 = arith.constant 0 : index
    %11 = vector.load %arg5[%c0_9, %c0_10] : memref<1x128xf32, #tpu.memory_space<vmem>>, vector<1x128xf32>
    %12 = vector.broadcast %11 : vector<1x128xf32> to vector<8x128xf32>
    %13 = arith.addf %10, %12 : vector<8x128xf32>
    %cst_11 = arith.constant 0.000000e+00 : f32
    %14 = vector.broadcast %cst_11 : f32 to vector<8x128xf32>
    %15 = arith.maximumf %13, %14 : vector<8x128xf32>
    %16 = arith.truncf %15 : vector<8x128xf32> to vector<8x128xbf16>
    %c0_12 = arith.constant 0 : index
    %c0_13 = arith.constant 0 : index
    %17 = vector.load %arg6[%c0_12, %c0_13] : memref<128x128xbf16, #tpu.memory_space<vmem>>, vector<128x128xbf16>
    %cst_14 = arith.constant dense<0.000000e+00> : vector<8x128xf32>
    %18 = tpu.matmul %16, %17, %cst_14 {dimension_numbers = #tpu.dot_dimension_numbers<[1], [0], [0], [1], [0, 0, 1, 1], [], []>} : vector<8x128xbf16>, vector<128x128xbf16>, vector<8x128xf32> -> vector<8x128xf32>
    %c0_15 = arith.constant 0 : index
    %c0_16 = arith.constant 0 : index
    %19 = vector.load %arg7[%c0_15, %c0_16] : memref<1x128xf32, #tpu.memory_space<vmem>>, vector<1x128xf32>
    %20 = vector.broadcast %19 : vector<1x128xf32> to vector<8x128xf32>
    %21 = arith.addf %18, %20 : vector<8x128xf32>
    %cst_17 = arith.constant 0.000000e+00 : f32
    %22 = vector.broadcast %cst_17 : f32 to vector<8x128xf32>
    %23 = arith.maximumf %21, %22 : vector<8x128xf32>
    %24 = arith.truncf %23 : vector<8x128xf32> to vector<8x128xbf16>
    %c0_18 = arith.constant 0 : index
    %c0_19 = arith.constant 0 : index
    %25 = vector.load %arg8[%c0_18, %c0_19] : memref<128x128xbf16, #tpu.memory_space<vmem>>, vector<128x128xbf16>
    %cst_20 = arith.constant dense<0.000000e+00> : vector<8x128xf32>
    %26 = tpu.matmul %24, %25, %cst_20 {dimension_numbers = #tpu.dot_dimension_numbers<[1], [0], [0], [1], [0, 0, 1, 1], [], []>} : vector<8x128xbf16>, vector<128x128xbf16>, vector<8x128xf32> -> vector<8x128xf32>
    %c0_21 = arith.constant 0 : index
    %c0_22 = arith.constant 0 : index
    %27 = vector.load %arg9[%c0_21, %c0_22] : memref<1x128xf32, #tpu.memory_space<vmem>>, vector<1x128xf32>
    %28 = vector.broadcast %27 : vector<1x128xf32> to vector<8x128xf32>
    %29 = arith.addf %26, %28 : vector<8x128xf32>
    %cst_23 = arith.constant 0.000000e+00 : f32
    %30 = vector.broadcast %cst_23 : f32 to vector<8x128xf32>
    %31 = arith.maximumf %29, %30 : vector<8x128xf32>
    %32 = arith.truncf %31 : vector<8x128xf32> to vector<8x128xbf16>
    %c0_24 = arith.constant 0 : index
    %c0_25 = arith.constant 0 : index
    %33 = vector.load %arg10[%c0_24, %c0_25] : memref<128x256xbf16, #tpu.memory_space<vmem>>, vector<128x256xbf16>
    %cst_26 = arith.constant dense<0.000000e+00> : vector<8x256xf32>
    %34 = tpu.matmul %32, %33, %cst_26 {dimension_numbers = #tpu.dot_dimension_numbers<[1], [0], [0], [1], [0, 0, 1, 1], [], []>} : vector<8x128xbf16>, vector<128x256xbf16>, vector<8x256xf32> -> vector<8x256xf32>
    %c0_27 = arith.constant 0 : index
    %c0_28 = arith.constant 0 : index
    %35 = vector.load %arg11[%c0_27, %c0_28] : memref<1x256xf32, #tpu.memory_space<vmem>>, vector<1x256xf32>
    %36 = vector.broadcast %35 : vector<1x256xf32> to vector<8x256xf32>
    %37 = arith.addf %34, %36 : vector<8x256xf32>
    %cst_29 = arith.constant 0.000000e+00 : f32
    %38 = vector.broadcast %cst_29 : f32 to vector<8x256xf32>
    %39 = arith.maximumf %37, %38 : vector<8x256xf32>
    %40 = arith.truncf %39 : vector<8x256xf32> to vector<8x256xbf16>
    %c0_30 = arith.constant 0 : index
    %c0_31 = arith.constant 0 : index
    %41 = vector.load %arg12[%c0_30, %c0_31] : memref<256x896xbf16, #tpu.memory_space<vmem>>, vector<256x896xbf16>
    %cst_32 = arith.constant dense<0.000000e+00> : vector<8x896xf32>
    %42 = tpu.matmul %40, %41, %cst_32 {dimension_numbers = #tpu.dot_dimension_numbers<[1], [0], [0], [1], [0, 0, 1, 1], [], []>} : vector<8x256xbf16>, vector<256x896xbf16>, vector<8x896xf32> -> vector<8x896xf32>
    %c0_33 = arith.constant 0 : index
    %c0_34 = arith.constant 0 : index
    %43 = vector.load %arg13[%c0_33, %c0_34] : memref<1x896xf32, #tpu.memory_space<vmem>>, vector<1x896xf32>
    %44 = vector.broadcast %43 : vector<1x896xf32> to vector<8x896xf32>
    %45 = arith.addf %42, %44 : vector<8x896xf32>
    %46 = arith.negf %45 : vector<8x896xf32>
    %47 = math.exp %46 : vector<8x896xf32>
    %cst_35 = arith.constant 1.000000e+00 : f32
    %48 = vector.broadcast %cst_35 : f32 to vector<8x896xf32>
    %49 = arith.addf %48, %47 : vector<8x896xf32>
    %50 = arith.divf %48, %49 : vector<8x896xf32>
    %c0_36 = arith.constant 0 : index
    %c0_37 = arith.constant 0 : index
    %51 = vector.load %arg14[%c0_36, %c0_37] : memref<8x896xf32, #tpu.memory_space<vmem>>, vector<8x896xf32>
    tpu.vector_store %arg14[%c0_36, %c0_37], %50 {strides = array<i32>} : memref<8x896xf32, #tpu.memory_space<vmem>>, vector<8x896xf32>,
    return
  }
  func.func @transform_0(%arg0: i32) -> (i32, i32) {
    %c0_i32 = arith.constant 0 : i32
    %c0_i32_0 = arith.constant 0 : i32
    return %arg0, %c0_i32 : i32, i32
  }
  func.func @transform_1(%arg0: i32) -> (i32, i32) {
    %c0_i32 = arith.constant 0 : i32
    %c0_i32_0 = arith.constant 0 : i32
    %c0_i32_1 = arith.constant 0 : i32
    return %c0_i32, %c0_i32_0 : i32, i32
  }
  func.func @transform_2(%arg0: i32) -> (i32, i32) {
    %c0_i32 = arith.constant 0 : i32
    %c0_i32_0 = arith.constant 0 : i32
    %c0_i32_1 = arith.constant 0 : i32
    return %c0_i32, %c0_i32_0 : i32, i32
  }
  func.func @transform_3(%arg0: i32) -> (i32, i32) {
    %c0_i32 = arith.constant 0 : i32
    %c0_i32_0 = arith.constant 0 : i32
    %c0_i32_1 = arith.constant 0 : i32
    return %c0_i32, %c0_i32_0 : i32, i32
  }
  func.func @transform_4(%arg0: i32) -> (i32, i32) {
    %c0_i32 = arith.constant 0 : i32
    %c0_i32_0 = arith.constant 0 : i32
    %c0_i32_1 = arith.constant 0 : i32
    return %c0_i32, %c0_i32_0 : i32, i32
  }
  func.func @transform_5(%arg0: i32) -> (i32, i32) {
    %c0_i32 = arith.constant 0 : i32
    %c0_i32_0 = arith.constant 0 : i32
    %c0_i32_1 = arith.constant 0 : i32
    return %c0_i32, %c0_i32_0 : i32, i32
  }
  func.func @transform_6(%arg0: i32) -> (i32, i32) {
    %c0_i32 = arith.constant 0 : i32
    %c0_i32_0 = arith.constant 0 : i32
    %c0_i32_1 = arith.constant 0 : i32
    return %c0_i32, %c0_i32_0 : i32, i32
  }
  func.func @transform_7(%arg0: i32) -> (i32, i32) {
    %c0_i32 = arith.constant 0 : i32
    %c0_i32_0 = arith.constant 0 : i32
    %c0_i32_1 = arith.constant 0 : i32
    return %c0_i32, %c0_i32_0 : i32, i32
  }
  func.func @transform_8(%arg0: i32) -> (i32, i32) {
    %c0_i32 = arith.constant 0 : i32
    %c0_i32_0 = arith.constant 0 : i32
    %c0_i32_1 = arith.constant 0 : i32
    return %c0_i32, %c0_i32_0 : i32, i32
  }
  func.func @transform_9(%arg0: i32) -> (i32, i32) {
    %c0_i32 = arith.constant 0 : i32
    %c0_i32_0 = arith.constant 0 : i32
    %c0_i32_1 = arith.constant 0 : i32
    return %c0_i32, %c0_i32_0 : i32, i32
  }
  func.func @transform_10(%arg0: i32) -> (i32, i32) {
    %c0_i32 = arith.constant 0 : i32
    %c0_i32_0 = arith.constant 0 : i32
    %c0_i32_1 = arith.constant 0 : i32
    return %c0_i32, %c0_i32_0 : i32, i32
  }
  func.func @transform_11(%arg0: i32) -> (i32, i32) {
    %c0_i32 = arith.constant 0 : i32
    %c0_i32_0 = arith.constant 0 : i32
    %c0_i32_1 = arith.constant 0 : i32
    return %c0_i32, %c0_i32_0 : i32, i32
  }
  func.func @transform_12(%arg0: i32) -> (i32, i32) {
    %c0_i32 = arith.constant 0 : i32
    %c0_i32_0 = arith.constant 0 : i32
    %c0_i32_1 = arith.constant 0 : i32
    return %c0_i32, %c0_i32_0 : i32, i32
  }
  func.func @transform_13(%arg0: i32) -> (i32, i32) {
    %c0_i32 = arith.constant 0 : i32
    %c0_i32_0 = arith.constant 0 : i32
    return %arg0, %c0_i32 : i32, i32
  }
}

</mosaic_0001>

<bundles_post_ra>
// kernel: autoencoder_forward.1
= control target key start
LH: loop header
LB: loop body
LE: loop exit
PB: predicated region body
PF: predicated region fallthrough
CT: control target
= control target key end

     0   :  { %vm3268_vm0 = vmmov 0   ;;  %s4280_s1 = inlined_call_operand.vmem [shape: bf16[896,256], index: 1, kind: input, shape index: {}]   ;;  %s4281_s0 = inlined_call_operand.vmem [shape: bf16[8,896], index: 0, kind: input, shape index: {}]   ;;  %s4282_s3 = inlined_call_operand.vmem [shape: bf16[256,128], index: 3, kind: input, shape index: {}]   ;;  %s4283_s5 = inlined_call_operand.vmem [shape: bf16[128,128], index: 5, kind: input, shape index: {}]   ;;  %s4284_s2 = inlined_call_operand.vmem [shape: f32[1,256], index: 2, kind: input, shape index: {}]   ;;  %s4285_s7 = inlined_call_operand.vmem [shape: bf16[128,128], index: 7, kind: input, shape index: {}]   ;;  %s4286_s4 = inlined_call_operand.vmem [shape: f32[1,128], index: 4, kind: input, shape index: {}]   ;;  %s4287_s9 = inlined_call_operand.vmem [shape: bf16[128,256], index: 9, kind: input, shape index: {}]   ;;  %s4288_s6 = inlined_call_operand.vmem [shape: f32[1,128], index: 6, kind: input, shape index: {}]   ;;  %s4289_s11 = inlined_call_operand.vmem [shape: bf16[256,896], index: 11, kind: input, shape index: {}]   ;;  %s4290_s8 = inlined_call_operand.vmem [shape: f32[1,128], index: 8, kind: input, shape index: {}]   ;;  %s4291_s10 = inlined_call_operand.vmem [shape: f32[1,256], index: 10, kind: input, shape index: {}]   ;;  %s4292_s12 = inlined_call_operand.vmem [shape: f32[1,896], index: 12, kind: input, shape index: {}]   ;;  %s4293_s13 = inlined_call_operand.vmem [shape: f32[8,896], index: 13, kind: output, shape index: {}]  }
   0x1   :  { %v2847_v0 = vld [vmem:[%s4280_s1 + $0x4] ss:$8 sps:$4 sm:$0xff]   ;;  %v2849_v1 = vld [vmem:[%s4280_s1] ss:$8 sps:$4 sm:$0xff]   ;;  %v2850_v2 = vld [vmem:[%s4280_s1 + $0x14] ss:$8 sps:$4 sm:$0xff]  }
   0x2   :  { %758 = vmatprep.subr.bf16.mxu0 %v2847_v0  ;;  %v2852_v3 = vld [vmem:[%s4280_s1 + $0x10] ss:$8 sps:$4 sm:$0xff]   ;;  %v2853_v4 = vld [vmem:[%s4280_s1 + $0x24] ss:$8 sps:$4 sm:$0xff]   ;;  %v2855_v5 = vld [vmem:[%s4280_s1 + $0x20] ss:$8 sps:$4 sm:$0xff]  }
   0x3   :  { %759 = vmatpush1.bf16.msra.mxu0 %v2849_v1  ;;  %v2856_v6 = vld [vmem:[%s4280_s1 + $0x34] ss:$8 sps:$4 sm:$0xff]   ;;  %v2858_v7 = vld [vmem:[%s4280_s1 + $0x30] ss:$8 sps:$4 sm:$0xff]   ;;  %v2859_v8 = vld [vmem:[%s4280_s1 + $0x44] ss:$8 sps:$4 sm:$0xff]  }
   0x4   :  { %760 = vmatprep.subr.bf16.mxu0 %v2850_v2  ;;  %v2861_v9 = vld [vmem:[%s4280_s1 + $0x40] ss:$8 sps:$4 sm:$0xff]   ;;  %v2862_v10 = vld [vmem:[%s4280_s1 + $0x54] ss:$8 sps:$4 sm:$0xff]   ;;  %v2864_v11 = vld [vmem:[%s4280_s1 + $0x50] ss:$8 sps:$4 sm:$0xff]  }
   0x5   :  { %v2865_v12 = vld [vmem:[%s4280_s1 + $0x64] ss:$8 sps:$4 sm:$0xff]   ;;  %v2867_v15 = vld [vmem:[%s4280_s1 + $0x60] ss:$8 sps:$4 sm:$0xff]   ;;  %v2868_v16 = vld [vmem:[%s4280_s1 + $0x74] ss:$8 sps:$4 sm:$0xff]  }
   0x6   :  { %v45_v13 = vld [vmem:[%s4281_s0] sm:$0xff]  ;;  %v2870_v17 = vld [vmem:[%s4280_s1 + $0x70] ss:$8 sps:$4 sm:$0xff]   ;;  %v2874_v20 = vld [vmem:[%s4280_s1 + $0x94] ss:$8 sps:$4 sm:$0xff]  }
   0x7   :  { %761 = vmatpush1.bf16.msra.mxu0 %v2852_v3  ;;  %v2440_v14 = vcombine.high %v45_v13, %v45_v13  ;;  %v2871_v18 = vld [vmem:[%s4280_s1 + $0x84] ss:$8 sps:$4 sm:$0xff]   ;;  %v2873_v19 = vld [vmem:[%s4280_s1 + $0x80] ss:$8 sps:$4 sm:$0xff]   ;;  %v2876_v21 = vld [vmem:[%s4280_s1 + $0x90] ss:$8 sps:$4 sm:$0xff]   ;;  %v2439_v36 = vcombine.low %v45_v13, %v45_v13 }
   0x8   :  { %762 = vmatprep.subr.bf16.mxu0 %v2853_v4  ;;  %v2877_v22 = vld [vmem:[%s4280_s1 + $0xa4] ss:$8 sps:$4 sm:$0xff]   ;;  %v2879_v23 = vld [vmem:[%s4280_s1 + $0xa0] ss:$8 sps:$4 sm:$0xff]   ;;  %v2880_v24 = vld [vmem:[%s4280_s1 + $0xb4] ss:$8 sps:$4 sm:$0xff]  }
   0x9   :  { %790 = vmatprep.mubr.bf16.mxu0 %v2440_v14  ;;  %v2882_v25 = vld [vmem:[%s4280_s1 + $0xb0] ss:$8 sps:$4 sm:$0xff]   ;;  %v2883_v26 = vld [vmem:[%s4280_s1 + $0xc4] ss:$8 sps:$4 sm:$0xff]   ;;  %v2885_v27 = vld [vmem:[%s4280_s1 + $0xc0] ss:$8 sps:$4 sm:$0xff]  }
   0xa   :  { %v2886_v28 = vld [vmem:[%s4280_s1 + $0xd4] ss:$8 sps:$4 sm:$0xff]   ;;  %v2888_v29 = vld [vmem:[%s4280_s1 + $0xd0] ss:$8 sps:$4 sm:$0xff]   ;;  %v2889_v30 = vld [vmem:[%s4280_s1 + $0xe4] ss:$8 sps:$4 sm:$0xff]  }
   0xb   :  { %763 = vmatpush1.bf16.msra.mxu0 %v2855_v5  ;;  %v2891_v31 = vld [vmem:[%s4280_s1 + $0xe0] ss:$8 sps:$4 sm:$0xff]   ;;  %v2892_v32 = vld [vmem:[%s4280_s1 + $0xf4] ss:$8 sps:$4 sm:$0xff]   ;;  %v2894_v33 = vld [vmem:[%s4280_s1 + $0xf0] ss:$8 sps:$4 sm:$0xff]  }
   0xc   :  { %764 = vmatprep.subr.bf16.mxu0 %v2856_v6  ;;  %v2899_v34 = vld [vmem:[%s4280_s1 + $0x104] ss:$8 sps:$4 sm:$0xff]   ;;  %v2897_v37 = vld [vmem:[%s4280_s1 + $0x100] ss:$8 sps:$4 sm:$0xff]   ;;  %v2902_v39 = vld [vmem:[%s4280_s1 + $0x114] ss:$8 sps:$4 sm:$0xff]  }
   0xd   :  { %v3444_v35 = vld [vmem:[%s4281_s0 + $0x8] sm:$0xff]  ;;  %v2900_v40 = vld [vmem:[%s4280_s1 + $0x110] ss:$8 sps:$4 sm:$0xff]   ;;  %v2908_v43 = vld [vmem:[%s4280_s1 + $0x134] ss:$8 sps:$4 sm:$0xff]  }
   0xe   :  { %v2442_v38 = vcombine.high %v3444_v35, %v3444_v35  ;;  %v2905_v41 = vld [vmem:[%s4280_s1 + $0x124] ss:$8 sps:$4 sm:$0xff]   ;;  %v2903_v42 = vld [vmem:[%s4280_s1 + $0x120] ss:$8 sps:$4 sm:$0xff]   ;;  %v2906_v44 = vld [vmem:[%s4280_s1 + $0x130] ss:$8 sps:$4 sm:$0xff]  }
   0xf   :  { %765 = vmatpush1.bf16.msra.mxu0 %v2858_v7  ;;  %v2911_v45 = vld [vmem:[%s4280_s1 + $0x144] ss:$8 sps:$4 sm:$0xff]   ;;  %v2909_v46 = vld [vmem:[%s4280_s1 + $0x140] ss:$8 sps:$4 sm:$0xff]   ;;  %v2914_v47 = vld [vmem:[%s4280_s1 + $0x154] ss:$8 sps:$4 sm:$0xff]  }
  0x10   :  { %766 = vmatprep.subr.bf16.mxu0 %v2859_v8  ;;  %v2912_v48 = vld [vmem:[%s4280_s1 + $0x150] ss:$8 sps:$4 sm:$0xff]   ;;  %v2917_v49 = vld [vmem:[%s4280_s1 + $0x164] ss:$8 sps:$4 sm:$0xff]   ;;  %v2915_v50 = vld [vmem:[%s4280_s1 + $0x160] ss:$8 sps:$4 sm:$0xff]  }
  0x11   :  { %v2920_v51 = vld [vmem:[%s4280_s1 + $0x174] ss:$8 sps:$4 sm:$0xff]   ;;  %v2918_v52 = vld [vmem:[%s4280_s1 + $0x170] ss:$8 sps:$4 sm:$0xff]   ;;  %v2923_v53 = vld [vmem:[%s4280_s1 + $0x184] ss:$8 sps:$4 sm:$0xff]  }
  0x12   :  { %v2921_v54 = vld [vmem:[%s4280_s1 + $0x180] ss:$8 sps:$4 sm:$0xff]   ;;  %v2926_v55 = vld [vmem:[%s4280_s1 + $0x194] ss:$8 sps:$4 sm:$0xff]   ;;  %v2924_v56 = vld [vmem:[%s4280_s1 + $0x190] ss:$8 sps:$4 sm:$0xff]  }
  0x13   :  { %767 = vmatpush1.bf16.msra.mxu0 %v2861_v9  ;;  %v2929_v57 = vld [vmem:[%s4280_s1 + $0x1a4] ss:$8 sps:$4 sm:$0xff]   ;;  %v2927_v60 = vld [vmem:[%s4280_s1 + $0x1a0] ss:$8 sps:$4 sm:$0xff]   ;;  %v3026_v63 = vld [vmem:[%s4282_s3 + $0x50] sm:$0xff]  }
  0x14   :  { %768 = vmatprep.subr.bf16.mxu0 %v2862_v10  ;;  %v3022_v58 = vld [vmem:[%s4282_s3 + $0x40] sm:$0xff]   ;;  %v3024_v61 = vld [vmem:[%s4282_s3 + $0x48] sm:$0xff]   ;;  %v2932_v0 = vld [vmem:[%s4280_s1 + $0x1b4] ss:$8 sps:$4 sm:$0xff]  }
  0x15   :  { %v3023_v59 = vld [vmem:[%s4282_s3] sm:$0xff]   ;;  %2728 = vmatprep.subr.bf16.mxu1 %v3022_v58  ;;  %v3025_v62 = vld [vmem:[%s4282_s3 + $0x8] sm:$0xff]   ;;  %v2930_v1 = vld [vmem:[%s4280_s1 + $0x1b0] ss:$8 sps:$4 sm:$0xff]  }
  0x16   :  { %2729 = vmatpush3.bf16.msra.mxu1 %v3023_v59  ;;  %v3027_v2 = vld [vmem:[%s4282_s3 + $0x10] sm:$0xff]   ;;  %v3028_v3 = vld [vmem:[%s4282_s3 + $0x58] sm:$0xff]   ;;  %v2935_v4 = vld [vmem:[%s4280_s1 + $0x1c4] ss:$8 sps:$4 sm:$0xff]  }
  0x17   :  { %769 = vmatpush1.bf16.msra.mxu0 %v2864_v11  ;;  %2730 = vmatprep.subr.bf16.mxu1 %v3024_v61  ;;  %v2933_v5 = vld [vmem:[%s4280_s1 + $0x1c0] ss:$8 sps:$4 sm:$0xff]   ;;  %v2938_v6 = vld [vmem:[%s4280_s1 + $0x1d4] ss:$8 sps:$4 sm:$0xff]   ;;  %v2936_v10 = vld [vmem:[%s4280_s1 + $0x1d0] ss:$8 sps:$4 sm:$0xff]  }
  0x18   :  { %770 = vmatprep.subr.bf16.mxu0 %v2865_v12  ;;  %v3029_v7 = vld [vmem:[%s4282_s3 + $0x18] sm:$0xff]   ;;  %v3030_v8 = vld [vmem:[%s4282_s3 + $0x60] sm:$0xff]   ;;  %v3032_v11 = vld [vmem:[%s4282_s3 + $0x68] sm:$0xff]  }
  0x19   :  { %v3031_v9 = vld [vmem:[%s4282_s3 + $0x20] sm:$0xff]   ;;  %v3033_v13 = vld [vmem:[%s4282_s3 + $0x28] sm:$0xff]   ;;  %v3006_v61 = vld [vmem:[%s4280_s1 + $0x330] ss:$8 sps:$4 sm:$0xff]  }
  0x1a   :  { %2731 = vmatpush3.bf16.msra.mxu1 %v3025_v62  ;;  %v2941_v12 = vld [vmem:[%s4280_s1 + $0x1e4] ss:$8 sps:$4 sm:$0xff]   ;;  %v2939_v14 = vld [vmem:[%s4280_s1 + $0x1e0] ss:$8 sps:$4 sm:$0xff]  }
  0x1b   :  { %771 = vmatpush1.bf16.msra.mxu0 %v2867_v15  ;;  %2732 = vmatprep.subr.bf16.mxu1 %v3026_v63  ;;  %v2944_v15 = vld [vmem:[%s4280_s1 + $0x1f4] ss:$8 sps:$4 sm:$0xff]   ;;  %v3005_v58 = vld [vmem:[%s4280_s1 + $0x324] ss:$8 sps:$4 sm:$0xff]   ;;  %v3003_v59 = vld [vmem:[%s4280_s1 + $0x320] ss:$8 sps:$4 sm:$0xff]  }
  0x1c   :  { %772 = vmatprep.subr.bf16.mxu0 %v2868_v16  ;;  %v2942_v16 = vld [vmem:[%s4280_s1 + $0x1f0] ss:$8 sps:$4 sm:$0xff]   ;;  %v3011_v62 = vld [vmem:[%s4280_s1 + $0x344] ss:$8 sps:$4 sm:$0xff]   ;;  %v3009_v63 = vld [vmem:[%s4280_s1 + $0x340] ss:$8 sps:$4 sm:$0xff]  }
  0x1e   :  { %2733 = vmatpush3.bf16.msra.mxu1 %v3027_v2  ;;  %v3017_v2 = vld [vmem:[%s4280_s1 + $0x364] ss:$8 sps:$4 sm:$0xff]  }
  0x1f   :  { %773 = vmatpush1.bf16.msra.mxu0 %v2870_v17  ;;  %2734 = vmatprep.subr.bf16.mxu1 %v3028_v3  ;;  %v2949_v17 = vld [vmem:[%s4280_s1 + $0x204] ss:$8 sps:$4 sm:$0xff]   ;;  %v3015_v3 = vld [vmem:[%s4280_s1 + $0x360] ss:$8 sps:$4 sm:$0xff]  }
  0x20   :  { %774 = vmatprep.subr.bf16.mxu0 %v2871_v18  ;;  %v3583_v18 = vld [vmem:[%s4281_s0 + $0x10] sm:$0xff] }
  0x22   :  { %2735 = vmatpush3.bf16.msra.mxu1 %v3029_v7  ;;  %v3034_v7 = vld [vmem:[%s4282_s3 + $0x70] sm:$0xff]  }
  0x23   :  { %775 = vmatpush1.bf16.msra.mxu0 %v2873_v19  ;;  %2736 = vmatprep.subr.bf16.mxu1 %v3030_v8  ;;  %v2441_v19 = vcombine.low %v3444_v35, %v3444_v35  ;;  %v2968_v35 = vld [vmem:[%s4280_s1 + $0x270] ss:$8 sps:$4 sm:$0xff]  }
  0x24   :  { %776 = vmatprep.subr.bf16.mxu0 %v2874_v20  ;;  %v2947_v20 = vld [vmem:[%s4280_s1 + $0x200] ss:$8 sps:$4 sm:$0xff]   ;;  %v3035_v8 = vld [vmem:[%s4282_s3 + $0x30] sm:$0xff]  }
  0x26   :  { %2737 = vmatpush3.bf16.msra.mxu1 %v3031_v9  ;;  %v3036_v9 = vld [vmem:[%s4282_s3 + $0x78] sm:$0xff]  }
  0x27   :  { %777 = vmatpush1.bf16.msra.mxu0 %v2876_v21  ;;  %2738 = vmatprep.subr.bf16.mxu1 %v3032_v11  ;;  %v2444_v21 = vcombine.high %v3583_v18, %v3583_v18  ;;  %v3267_v11 = vmov 0.0  }
  0x28   :  { %778 = vmatprep.subr.bf16.mxu0 %v2877_v22  ;;  %v2952_v22 = vld [vmem:[%s4280_s1 + $0x214] ss:$8 sps:$4 sm:$0xff]  }
  0x2a   :  { %2739 = vmatpush3.bf16.msra.mxu1 %v3033_v13 }
  0x2b   :  { %779 = vmatpush1.bf16.msra.mxu0 %v2879_v23  ;;  %v2950_v23 = vld [vmem:[%s4280_s1 + $0x210] ss:$8 sps:$4 sm:$0xff]   ;;  %2740 = vmatprep.subr.bf16.mxu1 %v3034_v7  ;;  %v3066_v7 = vld [vmem:[%s4287_s9 + $0x40] ss:$8 sps:$4 sm:$0xff]  }
  0x2c   :  { %780 = vmatprep.subr.bf16.mxu0 %v2880_v24  ;;  %v2955_v24 = vld [vmem:[%s4280_s1 + $0x224] ss:$8 sps:$4 sm:$0xff]  }
  0x2e   :  { %2741 = vmatpush3.bf16.msra.mxu1 %v3035_v8  ;;  %v3071_v8 = vld [vmem:[%s4287_s9 + $0x54] ss:$8 sps:$4 sm:$0xff]  }
  0x2f   :  { %781 = vmatpush1.bf16.msra.mxu0 %v2882_v25  ;;  %v2953_v25 = vld [vmem:[%s4280_s1 + $0x220] ss:$8 sps:$4 sm:$0xff]   ;;  %2742 = vmatprep.subr.bf16.mxu1 %v3036_v9  ;;  %v3069_v9 = vld [vmem:[%s4287_s9 + $0x50] ss:$8 sps:$4 sm:$0xff]  }
  0x30   :  { %782 = vmatprep.subr.bf16.mxu0 %v2883_v26  ;;  %v2958_v26 = vld [vmem:[%s4280_s1 + $0x234] ss:$8 sps:$4 sm:$0xff]  }
  0x33   :  { %783 = vmatpush1.bf16.msra.mxu0 %v2885_v27  ;;  %v2956_v27 = vld [vmem:[%s4280_s1 + $0x230] ss:$8 sps:$4 sm:$0xff]  }
  0x34   :  { %784 = vmatprep.subr.bf16.mxu0 %v2886_v28  ;;  %v2961_v28 = vld [vmem:[%s4280_s1 + $0x244] ss:$8 sps:$4 sm:$0xff]  }
  0x37   :  { %785 = vmatpush1.bf16.msra.mxu0 %v2888_v29  ;;  %v2959_v29 = vld [vmem:[%s4280_s1 + $0x240] ss:$8 sps:$4 sm:$0xff]  }
  0x38   :  { %786 = vmatprep.subr.bf16.mxu0 %v2889_v30  ;;  %v2964_v30 = vld [vmem:[%s4280_s1 + $0x254] ss:$8 sps:$4 sm:$0xff]  }
  0x3b   :  { %787 = vmatpush1.bf16.msra.mxu0 %v2891_v31  ;;  %v2962_v31 = vld [vmem:[%s4280_s1 + $0x250] ss:$8 sps:$4 sm:$0xff]  }
  0x3c   :  { %788 = vmatprep.subr.bf16.mxu0 %v2892_v32  ;;  %v2967_v32 = vld [vmem:[%s4280_s1 + $0x264] ss:$8 sps:$4 sm:$0xff]  }
  0x3f   :  { %789 = vmatpush1.bf16.msra.mxu0 %v2894_v33  ;;  %v2965_v33 = vld [vmem:[%s4280_s1 + $0x260] ss:$8 sps:$4 sm:$0xff]  }
  0x40   :  { %799 = vmatprep.subr.bf16.mxu0 %v2899_v34  ;;  %v2970_v34 = vld [vmem:[%s4280_s1 + $0x274] ss:$8 sps:$4 sm:$0xff]  }
  0x42   :  { %791 = vmatmul.mubr.bf16.vlgmr.msra.gmra.mrb[0].mxu0 %v2439_v36  ;;  %v2973_v36 = vld [vmem:[%s4280_s1 + $0x284] ss:$8 sps:$4 sm:$0xff]  }
  0x43   :  { %800 = vmatpush1.bf16.msra.mxu0 %v2897_v37  ;;  %831 = vmatprep.mubr.bf16.mxu0 %v2442_v38  ;;  %v2971_v37 = vld [vmem:[%s4280_s1 + $0x280] ss:$8 sps:$4 sm:$0xff]   ;;  %v2976_v38 = vld [vmem:[%s4280_s1 + $0x294] ss:$8 sps:$4 sm:$0xff]  }
  0x44   :  { %801 = vmatprep.subr.bf16.mxu0 %v2902_v39  ;;  %v2974_v39 = vld [vmem:[%s4280_s1 + $0x290] ss:$8 sps:$4 sm:$0xff]  }
  0x47   :  { %802 = vmatpush1.bf16.msra.mxu0 %v2900_v40  ;;  %v2979_v40 = vld [vmem:[%s4280_s1 + $0x2a4] ss:$8 sps:$4 sm:$0xff]  }
  0x48   :  { %803 = vmatprep.subr.bf16.mxu0 %v2905_v41  ;;  %v2977_v41 = vld [vmem:[%s4280_s1 + $0x2a0] ss:$8 sps:$4 sm:$0xff]  }
  0x4b   :  { %804 = vmatpush1.bf16.msra.mxu0 %v2903_v42  ;;  %v2982_v42 = vld [vmem:[%s4280_s1 + $0x2b4] ss:$8 sps:$4 sm:$0xff]  }
  0x4c   :  { %805 = vmatprep.subr.bf16.mxu0 %v2908_v43  ;;  %v2980_v43 = vld [vmem:[%s4280_s1 + $0x2b0] ss:$8 sps:$4 sm:$0xff]  }
  0x4f   :  { %806 = vmatpush1.bf16.msra.mxu0 %v2906_v44  ;;  %v2985_v44 = vld [vmem:[%s4280_s1 + $0x2c4] ss:$8 sps:$4 sm:$0xff]  }
  0x50   :  { %807 = vmatprep.subr.bf16.mxu0 %v2911_v45  ;;  %v2983_v45 = vld [vmem:[%s4280_s1 + $0x2c0] ss:$8 sps:$4 sm:$0xff]  }
  0x53   :  { %808 = vmatpush1.bf16.msra.mxu0 %v2909_v46  ;;  %v2988_v46 = vld [vmem:[%s4280_s1 + $0x2d4] ss:$8 sps:$4 sm:$0xff]  }
  0x54   :  { %809 = vmatprep.subr.bf16.mxu0 %v2914_v47  ;;  %v2986_v47 = vld [vmem:[%s4280_s1 + $0x2d0] ss:$8 sps:$4 sm:$0xff]  }
  0x57   :  { %810 = vmatpush1.bf16.msra.mxu0 %v2912_v48  ;;  %v2991_v48 = vld [vmem:[%s4280_s1 + $0x2e4] ss:$8 sps:$4 sm:$0xff]  }
  0x58   :  { %811 = vmatprep.subr.bf16.mxu0 %v2917_v49  ;;  %v2989_v49 = vld [vmem:[%s4280_s1 + $0x2e0] ss:$8 sps:$4 sm:$0xff]  }
  0x5b   :  { %812 = vmatpush1.bf16.msra.mxu0 %v2915_v50  ;;  %v2994_v50 = vld [vmem:[%s4280_s1 + $0x2f4] ss:$8 sps:$4 sm:$0xff]  }
  0x5c   :  { %813 = vmatprep.subr.bf16.mxu0 %v2920_v51  ;;  %v2992_v51 = vld [vmem:[%s4280_s1 + $0x2f0] ss:$8 sps:$4 sm:$0xff]  }
  0x5f   :  { %814 = vmatpush1.bf16.msra.mxu0 %v2918_v52  ;;  %v2999_v52 = vld [vmem:[%s4280_s1 + $0x304] ss:$8 sps:$4 sm:$0xff]  }
  0x60   :  { %815 = vmatprep.subr.bf16.mxu0 %v2923_v53  ;;  %v2443_v53 = vcombine.low %v3583_v18, %v3583_v18 }
  0x63   :  { %816 = vmatpush1.bf16.msra.mxu0 %v2921_v54  ;;  %v2997_v54 = vld [vmem:[%s4280_s1 + $0x300] ss:$8 sps:$4 sm:$0xff]  }
  0x64   :  { %817 = vmatprep.subr.bf16.mxu0 %v2926_v55  ;;  %v3002_v55 = vld [vmem:[%s4280_s1 + $0x314] ss:$8 sps:$4 sm:$0xff]  }
  0x67   :  { %818 = vmatpush1.bf16.msra.mxu0 %v2924_v56  ;;  %v3000_v56 = vld [vmem:[%s4280_s1 + $0x310] ss:$8 sps:$4 sm:$0xff]  }
  0x68   :  { %819 = vmatprep.subr.bf16.mxu0 %v2929_v57  ;;  %v3266_v57 = vmov 0  }
  0x6b   :  { %820 = vmatpush1.bf16.msra.mxu0 %v2927_v60  ;;  %v3008_v60 = vld [vmem:[%s4280_s1 + $0x334] ss:$8 sps:$4 sm:$0xff]  }
  0x6c   :  { %821 = vmatprep.subr.bf16.mxu0 %v2932_v0  ;;  %v3014_v0 = vld [vmem:[%s4280_s1 + $0x354] ss:$8 sps:$4 sm:$0xff]  }
  0x6f   :  { %822 = vmatpush1.bf16.msra.mxu0 %v2930_v1  ;;  %v3012_v1 = vld [vmem:[%s4280_s1 + $0x350] ss:$8 sps:$4 sm:$0xff]  }
  0x70   :  { %823 = vmatprep.subr.bf16.mxu0 %v2935_v4  ;;  %v3020_v4 = vld [vmem:[%s4280_s1 + $0x374] ss:$8 sps:$4 sm:$0xff]  }
  0x73   :  { %824 = vmatpush1.bf16.msra.mxu0 %v2933_v5  ;;  %v3018_v5 = vld [vmem:[%s4280_s1 + $0x370] ss:$8 sps:$4 sm:$0xff]  }
  0x74   :  { %825 = vmatprep.subr.bf16.mxu0 %v2938_v6  ;;  %v3021_v6 = vld [vmem:[%s4281_s0 + $0x18] ss:$0 sps:$4 sm:$0xff]  }
  0x77   :  { %826 = vmatpush1.bf16.msra.mxu0 %v2936_v10  ;;  %v3037_v10 = vld [vmem:[%s4282_s3 + $0x38] sm:$0xff]  }
  0x78   :  { %827 = vmatprep.subr.bf16.mxu0 %v2941_v12  ;;  %2743 = vmatpush3.bf16.msra.mxu1 %v3037_v10  ;;  %v163_v12 = vlaneseq  ;;  %v3074_v10 = vld [vmem:[%s4287_s9 + $0x64] ss:$8 sps:$4 sm:$0xff]  }
  0x79   :  { %2790 = vmatprep.subr.bf16.mxu1 %v3267_v11 }
  0x7a   :  { %v3749_v13 = vshrl.u32 %v163_v12, 7  ;;  %v3077_v12 = vld [vmem:[%s4287_s9 + $0x74] ss:$8 sps:$4 sm:$0xff]  }
  0x7b   :  { %828 = vmatpush1.bf16.msra.mxu0 %v2939_v14 }
  0x7c   :  { %829 = vmatprep.subr.bf16.mxu0 %v2944_v15  ;;  %v3752_v14 = vsub.s32 0, %v3749_v13  ;;  %v161_v15 = vld [vmem:[%s4284_s2] sm:$0x3] }
  0x7f   :  { %830 = vmatpush1.bf16.msra.mxu0 %v2942_v16  ;;  %v3758_v16 = vsub.s32 1, %v3749_v13 }
  0x80   :  { %840 = vmatprep.subr.bf16.mxu0 %v2949_v17  ;;  %v166_v17 = vrot.slane %v161_v15, %v3752_v14 }
  0x81   :  { %v170_v18 = vrot.slane %v161_v15, %v3758_v16  ;;  %v3075_v15 = vld [vmem:[%s4287_s9 + $0x70] ss:$8 sps:$4 sm:$0xff]  }
  0x82   :  { %832 = vmatmul.mubr.bf16.vlgmr.msra.gmra.mrb[0].mxu0 %v2441_v19 }
  0x83   :  { %841 = vmatpush1.bf16.msra.mxu0 %v2947_v20  ;;  %872 = vmatprep.mubr.bf16.mxu0 %v2444_v21 }
  0x84   :  { %842 = vmatprep.subr.bf16.mxu0 %v2952_v22 }
  0x87   :  { %843 = vmatpush1.bf16.msra.mxu0 %v2950_v23 }
  0x88   :  { %844 = vmatprep.subr.bf16.mxu0 %v2955_v24 }
  0x8b   :  { %845 = vmatpush1.bf16.msra.mxu0 %v2953_v25 }
  0x8c   :  { %846 = vmatprep.subr.bf16.mxu0 %v2958_v26 }
  0x8f   :  { %847 = vmatpush1.bf16.msra.mxu0 %v2956_v27 }
  0x90   :  { %848 = vmatprep.subr.bf16.mxu0 %v2961_v28  ;;  %v3038_v28 = vld [vmem:[%s4283_s5] sm:$0xff]  }
  0x93   :  { %849 = vmatpush1.bf16.msra.mxu0 %v2959_v29 }
  0x94   :  { %850 = vmatprep.subr.bf16.mxu0 %v2964_v30  ;;  %v3039_v30 = vld [vmem:[%s4283_s5 + $0x8] sm:$0xff]  }
  0x97   :  { %851 = vmatpush1.bf16.msra.mxu0 %v2962_v31  ;;  %v3040_v31 = vld [vmem:[%s4283_s5 + $0x10] sm:$0xff]  }
  0x98   :  { %852 = vmatprep.subr.bf16.mxu0 %v2967_v32  ;;  %v3041_v32 = vld [vmem:[%s4283_s5 + $0x18] sm:$0xff]  }
  0x9b   :  { %853 = vmatpush1.bf16.msra.mxu0 %v2965_v33  ;;  %v3042_v33 = vld [vmem:[%s4283_s5 + $0x20] sm:$0xff]  }
  0x9c   :  { %854 = vmatprep.subr.bf16.mxu0 %v2970_v34  ;;  %v3043_v34 = vld [vmem:[%s4283_s5 + $0x28] sm:$0xff]  }
  0x9f   :  { %855 = vmatpush1.bf16.msra.mxu0 %v2968_v35  ;;  %v3044_v35 = vld [vmem:[%s4283_s5 + $0x30] sm:$0xff]  }
  0xa0   :  { %856 = vmatprep.subr.bf16.mxu0 %v2973_v36  ;;  %v3045_v36 = vld [vmem:[%s4283_s5 + $0x38] sm:$0xff]  }
  0xa3   :  { %857 = vmatpush1.bf16.msra.mxu0 %v2971_v37 }
  0xa4   :  { %858 = vmatprep.subr.bf16.mxu0 %v2976_v38  ;;  %v2558_v38 = vld [vmem:[%s4286_s4] ss:$0 sm:$0xff] }
  0xa7   :  { %859 = vmatpush1.bf16.msra.mxu0 %v2974_v39 }
  0xa8   :  { %860 = vmatprep.subr.bf16.mxu0 %v2979_v40 }
  0xab   :  { %861 = vmatpush1.bf16.msra.mxu0 %v2977_v41 }
  0xac   :  { %862 = vmatprep.subr.bf16.mxu0 %v2982_v42 }
  0xaf   :  { %863 = vmatpush1.bf16.msra.mxu0 %v2980_v43 }
  0xb0   :  { %864 = vmatprep.subr.bf16.mxu0 %v2985_v44 }
  0xb3   :  { %865 = vmatpush1.bf16.msra.mxu0 %v2983_v45  ;;  %v3046_v45 = vld [vmem:[%s4285_s7] sm:$0xff]  }
  0xb4   :  { %866 = vmatprep.subr.bf16.mxu0 %v2988_v46 }
  0xb7   :  { %867 = vmatpush1.bf16.msra.mxu0 %v2986_v47  ;;  %v3047_v47 = vld [vmem:[%s4285_s7 + $0x8] sm:$0xff]  }
  0xb8   :  { %868 = vmatprep.subr.bf16.mxu0 %v2991_v48  ;;  %v3048_v48 = vld [vmem:[%s4285_s7 + $0x10] sm:$0xff]  }
  0xbb   :  { %869 = vmatpush1.bf16.msra.mxu0 %v2989_v49  ;;  %v3049_v49 = vld [vmem:[%s4285_s7 + $0x18] sm:$0xff]  }
  0xbc   :  { %870 = vmatprep.subr.bf16.mxu0 %v2994_v50  ;;  %v3050_v50 = vld [vmem:[%s4285_s7 + $0x20] sm:$0xff]  }
  0xbf   :  { %871 = vmatpush1.bf16.msra.mxu0 %v2992_v51  ;;  %v3051_v51 = vld [vmem:[%s4285_s7 + $0x28] sm:$0xff]  }
  0xc0   :  { %881 = vmatprep.subr.bf16.mxu0 %v2999_v52  ;;  %v3052_v52 = vld [vmem:[%s4285_s7 + $0x30] sm:$0xff]  }
  0xc2   :  { %873 = vmatmul.mubr.bf16.vlgmr.msra.gmra.mrb[0].mxu0 %v2443_v53  ;;  %v3053_v53 = vld [vmem:[%s4285_s7 + $0x38] sm:$0xff]  }
  0xc3   :  { %882 = vmatpush1.bf16.msra.mxu0 %v2997_v54  ;;  %913 = vmatprep.mubr.bf16.mxu0 %v3266_v57  ;;  %v3056_v54 = vld [vmem:[%s4287_s9 + $0x4] ss:$8 sps:$4 sm:$0xff]  }
  0xc4   :  { %883 = vmatprep.subr.bf16.mxu0 %v3002_v55  ;;  %v2575_v55 = vld [vmem:[%s4288_s6] ss:$0 sm:$0xff] }
  0xc7   :  { %884 = vmatpush1.bf16.msra.mxu0 %v3000_v56 }
  0xc8   :  { %885 = vmatprep.subr.bf16.mxu0 %v3005_v58 }
  0xcb   :  { %886 = vmatpush1.bf16.msra.mxu0 %v3003_v59 }
  0xcc   :  { %887 = vmatprep.subr.bf16.mxu0 %v3008_v60 }
  0xcf   :  { %888 = vmatpush1.bf16.msra.mxu0 %v3006_v61 }
  0xd0   :  { %889 = vmatprep.subr.bf16.mxu0 %v3011_v62 }
  0xd3   :  { %890 = vmatpush1.bf16.msra.mxu0 %v3009_v63  ;;  %v3054_v63 = vld [vmem:[%s4287_s9] ss:$8 sps:$4 sm:$0xff]  }
  0xd4   :  { %891 = vmatprep.subr.bf16.mxu0 %v3014_v0 }
  0xd7   :  { %892 = vmatpush1.bf16.msra.mxu0 %v3012_v1  ;;  %v3059_v1 = vld [vmem:[%s4287_s9 + $0x14] ss:$8 sps:$4 sm:$0xff]  }
  0xd8   :  { %893 = vmatprep.subr.bf16.mxu0 %v3017_v2  ;;  %v3057_v2 = vld [vmem:[%s4287_s9 + $0x10] ss:$8 sps:$4 sm:$0xff]  }
  0xdb   :  { %894 = vmatpush1.bf16.msra.mxu0 %v3015_v3  ;;  %v3062_v3 = vld [vmem:[%s4287_s9 + $0x24] ss:$8 sps:$4 sm:$0xff]  }
  0xdc   :  { %895 = vmatprep.subr.bf16.mxu0 %v3020_v4  ;;  %v3060_v4 = vld [vmem:[%s4287_s9 + $0x20] ss:$8 sps:$4 sm:$0xff]  }
  0xdf   :  { %896 = vmatpush1.bf16.msra.mxu0 %v3018_v5  ;;  %v3065_v5 = vld [vmem:[%s4287_s9 + $0x34] ss:$8 sps:$4 sm:$0xff]  }
  0xe2   :  { %914 = vmatmul.mubr.bf16.vlgmr.msra.gmra.mrb[0].mxu0 %v3021_v6  ;;  %v3068_v6 = vld [vmem:[%s4287_s9 + $0x44] ss:$8 sps:$4 sm:$0xff]  }
 0x1b5   :  { %v915_v19 = vpop.f32.mrb[0].mxu0 }
 0x1b6   :  { %v2830_v20 = vadd.f32 %v915_v19, %v166_v17  ;;  %v917_v21 = vpop.f32.mrb[1].mxu0  ;;  %v3080_v17 = vld [vmem:[%s4289_s11 + $0x4] ss:$28 sps:$4 sm:$0xff]   ;;  %v3083_v19 = vld [vmem:[%s4289_s11 + $0x14] ss:$28 sps:$4 sm:$0xff]  }
 0x1b7   :  { %v2831_v22 = vadd.f32 %v917_v21, %v170_v18  ;;  %v919_v23 = vpop.f32.mrb[2].mxu0  ;;  %v3081_v18 = vld [vmem:[%s4289_s11 + $0x10] ss:$28 sps:$4 sm:$0xff]   ;;  %2305 = vmatprep.subr.bf16.mxu0 %v3083_v19  ;;  %v3156_v19 = vld [vmem:[%s4289_s11 + $0x2d8] ss:$28 sps:$4 sm:$0xff]  }
 0x1b8   :  { %v922_v24 = vmax.f32 %v2830_v20, 0.0  ;;  %v920_v25 = vpop.f32.mrb[3].mxu0  ;;  %v3087_v20 = vld [vmem:[%s4289_s11 + $0x48] ss:$28 sps:$4 sm:$0xff]   ;;  %2306 = vmatpush1.bf16.msra.mxu0 %v3081_v18  ;;  %v3093_v23 = vld [vmem:[%s4289_s11 + $0x80] ss:$28 sps:$4 sm:$0xff]  }
 0x1b9   :  { %v923_v26 = vmax.f32 %v2831_v22, 0.0  ;;  %v3089_v21 = vld [vmem:[%s4289_s11 + $0x4c] ss:$28 sps:$4 sm:$0xff]   ;;  %v3095_v22 = vld [vmem:[%s4289_s11 + $0x84] ss:$28 sps:$4 sm:$0xff]  }
 0x1ba   :  { %v924_v29 = vpack.c.bf16 %v922_v24, %v922_v24  ;;  %2307 = vmatprep.subr.bf16.mxu0 %v3089_v21  ;;  %v3101_v24 = vld [vmem:[%s4289_s11 + $0xbc] ss:$28 sps:$4 sm:$0xff]   ;;  %v3162_v21 = vld [vmem:[%s4289_s11 + $0x310] ss:$28 sps:$4 sm:$0xff]  }
 0x1bb   :  { %v925_v27 = vpack.c.bf16 %v923_v26, %v923_v26  ;;  %v3099_v25 = vld [vmem:[%s4289_s11 + $0xb8] ss:$28 sps:$4 sm:$0xff]  }
 0x1bc   :  { %2308 = vmatpush1.bf16.msra.mxu0 %v3087_v20  ;;  %v3107_v26 = vld [vmem:[%s4289_s11 + $0xf4] ss:$28 sps:$4 sm:$0xff]   ;;  %v3158_v18 = vld [vmem:[%s4289_s11 + $0x2dc] ss:$28 sps:$4 sm:$0xff]  }
 0x1bd   :  { %1093 = vmatprep.mubr.bf16.mxu1 %v925_v27  ;;  %2309 = vmatprep.subr.bf16.mxu0 %v3095_v22  ;;  %v3105_v27 = vld [vmem:[%s4289_s11 + $0xf0] ss:$28 sps:$4 sm:$0xff]   ;;  %v3167_v22 = vld [vmem:[%s4289_s11 + $0x324] ss:$28 sps:$4 sm:$0xff]  }
 0x1be   :  { %1094 = vmatmul.mubr.bf16.vlgmr.msra.gmra.mrb[0].mxu1 %v924_v29  ;;  %v3111_v29 = vld [vmem:[%s4289_s11 + $0x128] ss:$28 sps:$4 sm:$0xff]   ;;  %v3164_v20 = vld [vmem:[%s4289_s11 + $0x314] ss:$28 sps:$4 sm:$0xff]  }
 0x1bf   :  { %2791 = vmatpush3.bf16.msra.mxu1 %v3038_v28  ;;  %2806 = vmatprep.mubr.msk.bf16.mxu1 %vm3268_vm0, %v3267_v11  ;;  %v3113_v28 = vld [vmem:[%s4289_s11 + $0x12c] ss:$28 sps:$4 sm:$0xff]  }
 0x1c0   :  { %2792 = vmatprep.subr.bf16.mxu1 %v3267_v11  ;;  %2310 = vmatpush1.bf16.msra.mxu0 %v3093_v23  ;;  %v3165_v23 = vld [vmem:[%s4289_s11 + $0x320] ss:$28 sps:$4 sm:$0xff]  }
 0x1c1   :  { %2311 = vmatprep.subr.bf16.mxu0 %v3101_v24  ;;  %v3170_v24 = vld [vmem:[%s4289_s11 + $0x34c] ss:$28 sps:$4 sm:$0xff]  }
 0x1c3   :  { %2793 = vmatpush3.bf16.msra.mxu1 %v3039_v30  ;;  %v3119_v30 = vld [vmem:[%s4289_s11 + $0x164] ss:$28 sps:$4 sm:$0xff]  }
 0x1c4   :  { %2794 = vmatprep.subr.bf16.mxu1 %v3267_v11  ;;  %2312 = vmatpush1.bf16.msra.mxu0 %v3099_v25  ;;  %v3168_v25 = vld [vmem:[%s4289_s11 + $0x348] ss:$28 sps:$4 sm:$0xff]  }
 0x1c5   :  { %2313 = vmatprep.subr.bf16.mxu0 %v3107_v26  ;;  %v3173_v26 = vld [vmem:[%s4289_s11 + $0x35c] ss:$28 sps:$4 sm:$0xff]  }
 0x1c7   :  { %2795 = vmatpush3.bf16.msra.mxu1 %v3040_v31  ;;  %v3117_v31 = vld [vmem:[%s4289_s11 + $0x160] ss:$28 sps:$4 sm:$0xff]  }
 0x1c8   :  { %2796 = vmatprep.subr.bf16.mxu1 %v3267_v11  ;;  %2314 = vmatpush1.bf16.msra.mxu0 %v3105_v27  ;;  %v3171_v27 = vld [vmem:[%s4289_s11 + $0x358] ss:$28 sps:$4 sm:$0xff]  }
 0x1c9   :  { %2315 = vmatprep.subr.bf16.mxu0 %v3113_v28  ;;  %v3176_v28 = vld [vmem:[%s4289_s11 + $0xc] ss:$28 sps:$4 sm:$0xff]  }
 0x1cb   :  { %2797 = vmatpush3.bf16.msra.mxu1 %v3041_v32  ;;  %v3125_v32 = vld [vmem:[%s4289_s11 + $0x19c] ss:$28 sps:$4 sm:$0xff]  }
 0x1cc   :  { %2798 = vmatprep.subr.bf16.mxu1 %v3267_v11  ;;  %2316 = vmatpush1.bf16.msra.mxu0 %v3111_v29  ;;  %v1345_v29 = vld [vmem:[%s4291_s10] sm:$0x3] }
 0x1cd   :  { %2317 = vmatprep.subr.bf16.mxu0 %v3119_v30  ;;  %v1350_v30 = vrot.slane %v1345_v29, %v3752_v14 }
 0x1cf   :  { %2799 = vmatpush3.bf16.msra.mxu1 %v3042_v33  ;;  %v3123_v33 = vld [vmem:[%s4289_s11 + $0x198] ss:$28 sps:$4 sm:$0xff]  }
 0x1d0   :  { %2800 = vmatprep.subr.bf16.mxu1 %v3267_v11  ;;  %2318 = vmatpush1.bf16.msra.mxu0 %v3117_v31  ;;  %v1354_v31 = vrot.slane %v1345_v29, %v3758_v16  ;;  %v4244_v29 = vld [vmem:[%s4292_s12] sm:$0xff] }
 0x1d1   :  { %2319 = vmatprep.subr.bf16.mxu0 %v3125_v32 }
 0x1d3   :  { %2801 = vmatpush3.bf16.msra.mxu1 %v3043_v34  ;;  %v3131_v34 = vld [vmem:[%s4289_s11 + $0x1d4] ss:$28 sps:$4 sm:$0xff]  }
 0x1d4   :  { %2802 = vmatprep.subr.bf16.mxu1 %v3267_v11  ;;  %2320 = vmatpush1.bf16.msra.mxu0 %v3123_v33 }
 0x1d5   :  { %2321 = vmatprep.subr.bf16.mxu0 %v3131_v34 }
 0x1d7   :  { %2803 = vmatpush3.bf16.msra.mxu1 %v3044_v35  ;;  %v3129_v35 = vld [vmem:[%s4289_s11 + $0x1d0] ss:$28 sps:$4 sm:$0xff]  }
 0x1d8   :  { %2804 = vmatprep.subr.bf16.mxu1 %v3267_v11  ;;  %2322 = vmatpush1.bf16.msra.mxu0 %v3129_v35 }
 0x1db   :  { %2805 = vmatpush3.bf16.msra.mxu1 %v3045_v36  ;;  %v3137_v36 = vld [vmem:[%s4289_s11 + $0x20c] ss:$28 sps:$4 sm:$0xff]  }
 0x1dc   :  { %2810 = vmatprep.subr.bf16.mxu1 %v3267_v11  ;;  %2323 = vmatprep.subr.bf16.mxu0 %v3137_v36 }
 0x291   :  { %v2744_v37 = vpop.f32.mrb[0].mxu1 }
 0x292   :  { %v2745_v39 = vpop.f32.mrb[1].mxu1 }
 0x293   :  { %v2746_v40 = vadd.f32 %v2745_v39, %v2744_v37  ;;  %v2747_v41 = vpop.f32.mrb[2].mxu1  ;;  %v3135_v37 = vld [vmem:[%s4289_s11 + $0x208] ss:$28 sps:$4 sm:$0xff]   ;;  %v3141_v39 = vld [vmem:[%s4289_s11 + $0x240] ss:$28 sps:$4 sm:$0xff]  }
 0x294   :  { %v2748_v42 = vpop.f32.mrb[3].mxu1  ;;  %2324 = vmatpush1.bf16.msra.mxu0 %v3135_v37  ;;  %v3147_v41 = vld [vmem:[%s4289_s11 + $0x278] ss:$28 sps:$4 sm:$0xff]  }
 0x295   :  { %v1096_v43 = vadd.f32 %v2746_v40, %v2558_v38  ;;  %v3143_v38 = vld [vmem:[%s4289_s11 + $0x244] ss:$28 sps:$4 sm:$0xff]   ;;  %v3149_v40 = vld [vmem:[%s4289_s11 + $0x27c] ss:$28 sps:$4 sm:$0xff]   ;;  %v3155_v42 = vld [vmem:[%s4289_s11 + $0x2b4] ss:$28 sps:$4 sm:$0xff]  }
 0x296   :  { %2325 = vmatprep.subr.bf16.mxu0 %v3143_v38 }
 0x297   :  { %v1101_v44 = vmax.f32 %v1096_v43, 0.0  ;;  %v3153_v43 = vld [vmem:[%s4289_s11 + $0x2b0] ss:$28 sps:$4 sm:$0xff]  }
 0x298   :  { %2326 = vmatpush1.bf16.msra.mxu0 %v3141_v39 }
 0x299   :  { %v1102_v46 = vpack.c.bf16 %v1101_v44, %v1101_v44  ;;  %2327 = vmatprep.subr.bf16.mxu0 %v3149_v40  ;;  %v3161_v44 = vld [vmem:[%s4289_s11 + $0x2ec] ss:$28 sps:$4 sm:$0xff]  }
 0x29b   :  { %2807 = vmatmul.mubr.bf16.vlgmr.msra.gmra.mrb[4].mxu1 %v1102_v46  ;;  %v2584_v46 = vld [vmem:[%s4290_s8] ss:$0 sm:$0xff] }
 0x29c   :  { %2811 = vmatpush3.bf16.msra.mxu1 %v3046_v45  ;;  %2826 = vmatprep.mubr.msk.bf16.mxu1 %vm3268_vm0, %v3267_v11  ;;  %v3159_v45 = vld [vmem:[%s4289_s11 + $0x2e8] ss:$28 sps:$4 sm:$0xff]  }
 0x29d   :  { %2812 = vmatprep.subr.bf16.mxu1 %v3267_v11  ;;  %2328 = vmatpush1.bf16.msra.mxu0 %v3147_v41  ;;  %v3174_v41 = vld [vmem:[%s4289_s11 + $0x8] ss:$28 sps:$4 sm:$0xff]  }
 0x29e   :  { %2329 = vmatprep.subr.bf16.mxu0 %v3155_v42 }
 0x2a0   :  { %2813 = vmatpush3.bf16.msra.mxu1 %v3047_v47 }
 0x2a1   :  { %2814 = vmatprep.subr.bf16.mxu1 %v3267_v11  ;;  %2330 = vmatpush1.bf16.msra.mxu0 %v3153_v43  ;;  %v3179_v43 = vld [vmem:[%s4289_s11 + $0x44] ss:$28 sps:$4 sm:$0xff]  }
 0x2a2   :  { %2331 = vmatprep.subr.bf16.mxu0 %v3161_v44  ;;  %v3177_v44 = vld [vmem:[%s4289_s11 + $0x40] ss:$28 sps:$4 sm:$0xff]  }
 0x2a4   :  { %2815 = vmatpush3.bf16.msra.mxu1 %v3048_v48 }
 0x2a5   :  { %2816 = vmatprep.subr.bf16.mxu1 %v3267_v11  ;;  %2332 = vmatpush1.bf16.msra.mxu0 %v3159_v45  ;;  %v3182_v45 = vld [vmem:[%s4289_s11 + $0x7c] ss:$28 sps:$4 sm:$0xff]  }
 0x2a6   :  { %2333 = vmatprep.subr.bf16.mxu0 %v3167_v22  ;;  %v3232_v22 = vld [vmem:[%s4289_s11 + $0x2f0] ss:$28 sps:$4 sm:$0xff]  }
 0x2a8   :  { %2817 = vmatpush3.bf16.msra.mxu1 %v3049_v49 }
 0x2a9   :  { %2818 = vmatprep.subr.bf16.mxu1 %v3267_v11  ;;  %2334 = vmatpush1.bf16.msra.mxu0 %v3165_v23  ;;  %v3233_v23 = vld [vmem:[%s4289_s11 + $0x130] ss:$28 sps:$4 sm:$0xff]  }
 0x2aa   :  { %2335 = vmatprep.subr.bf16.mxu0 %v3173_v26  ;;  %v3236_v26 = vld [vmem:[%s4289_s11 + $0x360] ss:$28 sps:$4 sm:$0xff]  }
 0x2ac   :  { %2819 = vmatpush3.bf16.msra.mxu1 %v3050_v50 }
 0x2ad   :  { %2820 = vmatprep.subr.bf16.mxu1 %v3267_v11  ;;  %2336 = vmatpush1.bf16.msra.mxu0 %v3171_v27  ;;  %v3237_v27 = vld [vmem:[%s4289_s11 + $0x1a0] ss:$28 sps:$4 sm:$0xff]  }
 0x2b0   :  { %2821 = vmatpush3.bf16.msra.mxu1 %v3051_v51 }
 0x2b1   :  { %2822 = vmatprep.subr.bf16.mxu1 %v3267_v11 }
 0x2b4   :  { %2823 = vmatpush3.bf16.msra.mxu1 %v3052_v52 }
 0x2b5   :  { %2824 = vmatprep.subr.bf16.mxu1 %v3267_v11  ;;  %v3072_v11 = vld [vmem:[%s4287_s9 + $0x60] ss:$8 sps:$4 sm:$0xff]  }
 0x2b8   :  { %2825 = vmatpush3.bf16.msra.mxu1 %v3053_v53  ;;  %v3078_v53 = vld [vmem:[%s4289_s11] ss:$28 sps:$4 sm:$0xff]  }
 0x2b9   :  { %1437 = vmatprep.subr.bf16.mxu1 %v3056_v54 }
 0x36e   :  { %v1208_v56 = vpop.f32.mrb[4].mxu1 }
 0x36f   :  { %v1209_v58 = vadd.f32 %v2575_v55, %v1208_v56  ;;  %v2808_v59 = vpop.f32.mrb[5].mxu1  ;;  %v3086_v55 = vld [vmem:[%s4289_s11 + $0x3c] ss:$28 sps:$4 sm:$0xff]  }
 0x370   :  { %v1211_v60 = vpop.f32.mrb[6].mxu1  ;;  %v3084_v56 = vld [vmem:[%s4289_s11 + $0x38] ss:$28 sps:$4 sm:$0xff]   ;;  %v3090_v59 = vld [vmem:[%s4289_s11 + $0x70] ss:$28 sps:$4 sm:$0xff]  }
 0x371   :  { %v1214_v61 = vmax.f32 %v1209_v58, 0.0  ;;  %v2809_v62 = vpop.f32.mrb[7].mxu1  ;;  %v3092_v58 = vld [vmem:[%s4289_s11 + $0x74] ss:$28 sps:$4 sm:$0xff]   ;;  %v3098_v60 = vld [vmem:[%s4289_s11 + $0xac] ss:$28 sps:$4 sm:$0xff]  }
 0x372   :  { %v3104_v62 = vld [vmem:[%s4289_s11 + $0xe4] ss:$28 sps:$4 sm:$0xff]  }
 0x373   :  { %v1215_v0 = vpack.c.bf16 %v1214_v61, %v1214_v61  ;;  %v3096_v61 = vld [vmem:[%s4289_s11 + $0xa8] ss:$28 sps:$4 sm:$0xff]  }
 0x375   :  { %2827 = vmatmul.mubr.bf16.vlgmr.msra.gmra.mrb[8].mxu1 %v1215_v0  ;;  %v3110_v0 = vld [vmem:[%s4289_s11 + $0x11c] ss:$28 sps:$4 sm:$0xff]  }
 0x376   :  { %1438 = vmatpush1.bf16.msra.mxu1 %v3054_v63  ;;  %1469 = vmatprep.mubr.bf16.mxu1 %v3266_v57  ;;  %v3063_v57 = vld [vmem:[%s4287_s9 + $0x30] ss:$8 sps:$4 sm:$0xff]   ;;  %v3102_v63 = vld [vmem:[%s4289_s11 + $0xe0] ss:$28 sps:$4 sm:$0xff]  }
 0x377   :  { %1439 = vmatprep.subr.bf16.mxu1 %v3059_v1  ;;  %v3108_v1 = vld [vmem:[%s4289_s11 + $0x118] ss:$28 sps:$4 sm:$0xff]  }
 0x37a   :  { %1440 = vmatpush1.bf16.msra.mxu1 %v3057_v2  ;;  %v3116_v2 = vld [vmem:[%s4289_s11 + $0x154] ss:$28 sps:$4 sm:$0xff]  }
 0x37b   :  { %1441 = vmatprep.subr.bf16.mxu1 %v3062_v3  ;;  %v3114_v3 = vld [vmem:[%s4289_s11 + $0x150] ss:$28 sps:$4 sm:$0xff]  }
 0x37e   :  { %1442 = vmatpush1.bf16.msra.mxu1 %v3060_v4  ;;  %v3122_v4 = vld [vmem:[%s4289_s11 + $0x18c] ss:$28 sps:$4 sm:$0xff]  }
 0x37f   :  { %1443 = vmatprep.subr.bf16.mxu1 %v3065_v5  ;;  %v3120_v5 = vld [vmem:[%s4289_s11 + $0x188] ss:$28 sps:$4 sm:$0xff]  }
 0x382   :  { %1444 = vmatpush1.bf16.msra.mxu1 %v3063_v57  ;;  %v3128_v57 = vld [vmem:[%s4289_s11 + $0x1c4] ss:$28 sps:$4 sm:$0xff]  }
 0x383   :  { %1445 = vmatprep.subr.bf16.mxu1 %v3068_v6  ;;  %v3126_v6 = vld [vmem:[%s4289_s11 + $0x1c0] ss:$28 sps:$4 sm:$0xff]  }
 0x386   :  { %1446 = vmatpush1.bf16.msra.mxu1 %v3066_v7  ;;  %v3134_v7 = vld [vmem:[%s4289_s11 + $0x1fc] ss:$28 sps:$4 sm:$0xff]  }
 0x387   :  { %1447 = vmatprep.subr.bf16.mxu1 %v3071_v8  ;;  %v3132_v8 = vld [vmem:[%s4289_s11 + $0x1f8] ss:$28 sps:$4 sm:$0xff]  }
 0x38a   :  { %1448 = vmatpush1.bf16.msra.mxu1 %v3069_v9  ;;  %v3140_v9 = vld [vmem:[%s4289_s11 + $0x234] ss:$28 sps:$4 sm:$0xff]  }
 0x38b   :  { %1449 = vmatprep.subr.bf16.mxu1 %v3074_v10  ;;  %v3138_v10 = vld [vmem:[%s4289_s11 + $0x230] ss:$28 sps:$4 sm:$0xff]  }
 0x38e   :  { %1450 = vmatpush1.bf16.msra.mxu1 %v3072_v11  ;;  %v3146_v11 = vld [vmem:[%s4289_s11 + $0x26c] ss:$28 sps:$4 sm:$0xff]  }
 0x38f   :  { %1451 = vmatprep.subr.bf16.mxu1 %v3077_v12  ;;  %v3144_v12 = vld [vmem:[%s4289_s11 + $0x268] ss:$28 sps:$4 sm:$0xff]  }
 0x392   :  { %1452 = vmatpush1.bf16.msra.mxu1 %v3075_v15  ;;  %v3152_v15 = vld [vmem:[%s4289_s11 + $0x2a4] ss:$28 sps:$4 sm:$0xff]  }
 0x393   :  { %2223 = vmatprep.subr.bf16.mxu1 %v3080_v17  ;;  %v3150_v17 = vld [vmem:[%s4289_s11 + $0x2a0] ss:$28 sps:$4 sm:$0xff]  }
 0x448   :  { %v1321_v47 = vpop.f32.mrb[8].mxu1 }
 0x449   :  { %v1322_v48 = vadd.f32 %v2584_v46, %v1321_v47  ;;  %v2828_v49 = vpop.f32.mrb[9].mxu1  ;;  %v3180_v46 = vld [vmem:[%s4289_s11 + $0x78] ss:$28 sps:$4 sm:$0xff]  }
 0x44a   :  { %v1324_v50 = vpop.f32.mrb[10].mxu1  ;;  %v3185_v47 = vld [vmem:[%s4289_s11 + $0xb4] ss:$28 sps:$4 sm:$0xff]   ;;  %v3188_v49 = vld [vmem:[%s4289_s11 + $0xec] ss:$28 sps:$4 sm:$0xff]  }
 0x44b   :  { %v1327_v51 = vmax.f32 %v1322_v48, 0.0  ;;  %v2829_v52 = vpop.f32.mrb[11].mxu1  ;;  %v3183_v48 = vld [vmem:[%s4289_s11 + $0xb0] ss:$28 sps:$4 sm:$0xff]   ;;  %v3186_v50 = vld [vmem:[%s4289_s11 + $0xe8] ss:$28 sps:$4 sm:$0xff]  }
 0x44c   :  { %v3189_v52 = vld [vmem:[%s4289_s11 + $0x120] ss:$28 sps:$4 sm:$0xff]  }
 0x44d   :  { %v1328_v54 = vpack.c.bf16 %v1327_v51, %v1327_v51  ;;  %v3191_v51 = vld [vmem:[%s4289_s11 + $0x124] ss:$28 sps:$4 sm:$0xff]  }
 0x44f   :  { %1470 = vmatmul.mubr.bf16.vlgmr.msra.gmra.mrb[12].mxu1 %v1328_v54  ;;  %v3192_v54 = vld [vmem:[%s4289_s11 + $0x158] ss:$28 sps:$4 sm:$0xff]  }
 0x450   :  { %2224 = vmatpush1.bf16.msra.mxu1 %v3078_v53  ;;  %v3194_v53 = vld [vmem:[%s4289_s11 + $0x15c] ss:$28 sps:$4 sm:$0xff]  }
 0x451   :  { %2225 = vmatprep.subr.bf16.mxu1 %v3086_v55  ;;  %v3197_v55 = vld [vmem:[%s4289_s11 + $0x194] ss:$28 sps:$4 sm:$0xff]  }
 0x454   :  { %2226 = vmatpush1.bf16.msra.mxu1 %v3084_v56  ;;  %v3195_v56 = vld [vmem:[%s4289_s11 + $0x190] ss:$28 sps:$4 sm:$0xff]  }
 0x455   :  { %2227 = vmatprep.subr.bf16.mxu1 %v3092_v58  ;;  %v3200_v58 = vld [vmem:[%s4289_s11 + $0x1cc] ss:$28 sps:$4 sm:$0xff]  }
 0x458   :  { %2228 = vmatpush1.bf16.msra.mxu1 %v3090_v59  ;;  %v3198_v59 = vld [vmem:[%s4289_s11 + $0x1c8] ss:$28 sps:$4 sm:$0xff]  }
 0x459   :  { %2229 = vmatprep.subr.bf16.mxu1 %v3098_v60  ;;  %v3203_v60 = vld [vmem:[%s4289_s11 + $0x204] ss:$28 sps:$4 sm:$0xff]  }
 0x45c   :  { %2230 = vmatpush1.bf16.msra.mxu1 %v3096_v61  ;;  %v3201_v61 = vld [vmem:[%s4289_s11 + $0x200] ss:$28 sps:$4 sm:$0xff]  }
 0x45d   :  { %2231 = vmatprep.subr.bf16.mxu1 %v3104_v62  ;;  %v3206_v62 = vld [vmem:[%s4289_s11 + $0x23c] ss:$28 sps:$4 sm:$0xff]  }
 0x460   :  { %2232 = vmatpush1.bf16.msra.mxu1 %v3102_v63  ;;  %v3204_v63 = vld [vmem:[%s4289_s11 + $0x238] ss:$28 sps:$4 sm:$0xff]  }
 0x461   :  { %2233 = vmatprep.subr.bf16.mxu1 %v3110_v0  ;;  %v3209_v0 = vld [vmem:[%s4289_s11 + $0x274] ss:$28 sps:$4 sm:$0xff]  }
 0x464   :  { %2234 = vmatpush1.bf16.msra.mxu1 %v3108_v1  ;;  %v3207_v1 = vld [vmem:[%s4289_s11 + $0x270] ss:$28 sps:$4 sm:$0xff]  }
 0x465   :  { %2235 = vmatprep.subr.bf16.mxu1 %v3116_v2  ;;  %v3212_v2 = vld [vmem:[%s4289_s11 + $0x2ac] ss:$28 sps:$4 sm:$0xff]  }
 0x468   :  { %2236 = vmatpush1.bf16.msra.mxu1 %v3114_v3  ;;  %v3210_v3 = vld [vmem:[%s4289_s11 + $0x2a8] ss:$28 sps:$4 sm:$0xff]  }
 0x469   :  { %2237 = vmatprep.subr.bf16.mxu1 %v3122_v4  ;;  %v3215_v4 = vld [vmem:[%s4289_s11 + $0x2e4] ss:$28 sps:$4 sm:$0xff]  }
 0x46c   :  { %2238 = vmatpush1.bf16.msra.mxu1 %v3120_v5  ;;  %v3213_v5 = vld [vmem:[%s4289_s11 + $0x2e0] ss:$28 sps:$4 sm:$0xff]  }
 0x46d   :  { %2239 = vmatprep.subr.bf16.mxu1 %v3128_v57  ;;  %v3218_v57 = vld [vmem:[%s4289_s11 + $0x31c] ss:$28 sps:$4 sm:$0xff]  }
 0x470   :  { %2240 = vmatpush1.bf16.msra.mxu1 %v3126_v6  ;;  %v3216_v6 = vld [vmem:[%s4289_s11 + $0x318] ss:$28 sps:$4 sm:$0xff]  }
 0x471   :  { %2241 = vmatprep.subr.bf16.mxu1 %v3134_v7  ;;  %v3221_v7 = vld [vmem:[%s4289_s11 + $0x354] ss:$28 sps:$4 sm:$0xff]  }
 0x474   :  { %2242 = vmatpush1.bf16.msra.mxu1 %v3132_v8  ;;  %v3219_v8 = vld [vmem:[%s4289_s11 + $0x350] ss:$28 sps:$4 sm:$0xff]  }
 0x475   :  { %2243 = vmatprep.subr.bf16.mxu1 %v3140_v9  ;;  %v3222_v9 = vld [vmem:[%s4289_s11 + $0x1d8] ss:$28 sps:$4 sm:$0xff]  }
 0x478   :  { %2244 = vmatpush1.bf16.msra.mxu1 %v3138_v10  ;;  %v3223_v10 = vld [vmem:[%s4289_s11 + $0x18] ss:$28 sps:$4 sm:$0xff]  }
 0x479   :  { %2245 = vmatprep.subr.bf16.mxu1 %v3146_v11  ;;  %v3224_v11 = vld [vmem:[%s4289_s11 + $0x210] ss:$28 sps:$4 sm:$0xff]  }
 0x47c   :  { %2246 = vmatpush1.bf16.msra.mxu1 %v3144_v12  ;;  %v3225_v12 = vld [vmem:[%s4289_s11 + $0x50] ss:$28 sps:$4 sm:$0xff]  }
 0x47d   :  { %2247 = vmatprep.subr.bf16.mxu1 %v3152_v15  ;;  %v3226_v15 = vld [vmem:[%s4289_s11 + $0x248] ss:$28 sps:$4 sm:$0xff]  }
 0x480   :  { %2248 = vmatpush1.bf16.msra.mxu1 %v3150_v17  ;;  %v3227_v17 = vld [vmem:[%s4289_s11 + $0x88] ss:$28 sps:$4 sm:$0xff]  }
 0x481   :  { %2249 = vmatprep.subr.bf16.mxu1 %v3158_v18  ;;  %v3228_v18 = vld [vmem:[%s4289_s11 + $0x280] ss:$28 sps:$4 sm:$0xff]  }
 0x484   :  { %2250 = vmatpush1.bf16.msra.mxu1 %v3156_v19  ;;  %v3229_v19 = vld [vmem:[%s4289_s11 + $0xc0] ss:$28 sps:$4 sm:$0xff]  }
 0x485   :  { %2251 = vmatprep.subr.bf16.mxu1 %v3164_v20  ;;  %v3230_v20 = vld [vmem:[%s4289_s11 + $0x2b8] ss:$28 sps:$4 sm:$0xff]  }
 0x488   :  { %2252 = vmatpush1.bf16.msra.mxu1 %v3162_v21  ;;  %v3231_v21 = vld [vmem:[%s4289_s11 + $0xf8] ss:$28 sps:$4 sm:$0xff]  }
 0x489   :  { %2253 = vmatprep.subr.bf16.mxu1 %v3170_v24  ;;  %v3234_v24 = vld [vmem:[%s4289_s11 + $0x328] ss:$28 sps:$4 sm:$0xff]  }
 0x48c   :  { %2254 = vmatpush1.bf16.msra.mxu1 %v3168_v25  ;;  %v3235_v25 = vld [vmem:[%s4289_s11 + $0x168] ss:$28 sps:$4 sm:$0xff]  }
 0x48d   :  { %2264 = vmatprep.subr.bf16.mxu1 %v3176_v28  ;;  %v1630_v28 = vsub.s32 4, %v3749_v13 }
 0x522   :  { %v1471_v32 = vpop.f32.mrb[12].mxu1 }
 0x523   :  { %v1472_v33 = vadd.f32 %v1471_v32, %v1350_v30  ;;  %v1473_v34 = vpop.f32.mrb[13].mxu1  ;;  %v1634_v30 = vsub.s32 5, %v3749_v13  ;;  %v1631_v32 = vrot.slane %v4244_v29, %v1630_v28 }
 0x524   :  { %v1474_v35 = vadd.f32 %v1473_v34, %v1354_v31  ;;  %v1475_v36 = vpop.f32.mrb[14].mxu1  ;;  %v1615_v31 = vrot.slane %v4244_v29, %v3752_v14 }
 0x525   :  { %v1478_v37 = vmax.f32 %v1472_v33, 0.0  ;;  %v1476_v38 = vpop.f32.mrb[15].mxu1  ;;  %v1619_v33 = vrot.slane %v4244_v29, %v3758_v16  ;;  %v1635_v34 = vrot.slane %v4244_v29, %v1634_v30 }
 0x526   :  { %v1479_v39 = vmax.f32 %v1474_v35, 0.0 }
 0x527   :  { %v4092_v42 = vpack.c.bf16 %v1478_v37, %v1478_v37 }
 0x528   :  { %v4087_v40 = vpack.c.bf16 %v1479_v39, %v1479_v39 }
 0x52a   :  { %2255 = vmatprep.mubr.bf16.mxu1 %v4087_v40  ;;  %2337 = vmatprep.mubr.bf16.mxu0 %v4087_v40 }
 0x52b   :  { %2256 = vmatmul.mubr.bf16.vlgmr.msra.gmra.mrb[16].mxu1 %v4092_v42  ;;  %2338 = vmatmul.mubr.bf16.vlgmr.msra.gmra.mrb[4].mxu0 %v4092_v42 }
 0x52c   :  { %2265 = vmatpush1.bf16.msra.mxu1 %v3174_v41  ;;  %2296 = vmatprep.mubr.bf16.mxu1 %v4087_v40 }
 0x52d   :  { %2266 = vmatprep.subr.bf16.mxu1 %v3179_v43 }
 0x530   :  { %2267 = vmatpush1.bf16.msra.mxu1 %v3177_v44 }
 0x531   :  { %2268 = vmatprep.subr.bf16.mxu1 %v3182_v45 }
 0x534   :  { %2269 = vmatpush1.bf16.msra.mxu1 %v3180_v46 }
 0x535   :  { %2270 = vmatprep.subr.bf16.mxu1 %v3185_v47 }
 0x538   :  { %2271 = vmatpush1.bf16.msra.mxu1 %v3183_v48 }
 0x539   :  { %2272 = vmatprep.subr.bf16.mxu1 %v3188_v49 }
 0x53c   :  { %2273 = vmatpush1.bf16.msra.mxu1 %v3186_v50 }
 0x53d   :  { %2274 = vmatprep.subr.bf16.mxu1 %v3191_v51 }
 0x540   :  { %2275 = vmatpush1.bf16.msra.mxu1 %v3189_v52 }
 0x541   :  { %2276 = vmatprep.subr.bf16.mxu1 %v3194_v53 }
 0x544   :  { %2277 = vmatpush1.bf16.msra.mxu1 %v3192_v54 }
 0x545   :  { %2278 = vmatprep.subr.bf16.mxu1 %v3197_v55 }
 0x548   :  { %2279 = vmatpush1.bf16.msra.mxu1 %v3195_v56 }
 0x549   :  { %2280 = vmatprep.subr.bf16.mxu1 %v3200_v58 }
 0x54c   :  { %2281 = vmatpush1.bf16.msra.mxu1 %v3198_v59 }
 0x54d   :  { %2282 = vmatprep.subr.bf16.mxu1 %v3203_v60 }
 0x550   :  { %2283 = vmatpush1.bf16.msra.mxu1 %v3201_v61 }
 0x551   :  { %2284 = vmatprep.subr.bf16.mxu1 %v3206_v62  ;;  %v1622_v62 = vsub.s32 2, %v3749_v13 }
 0x554   :  { %2285 = vmatpush1.bf16.msra.mxu1 %v3204_v63  ;;  %v1626_v63 = vsub.s32 3, %v3749_v13 }
 0x555   :  { %2286 = vmatprep.subr.bf16.mxu1 %v3209_v0  ;;  %v1623_v0 = vrot.slane %v4244_v29, %v1622_v62 }
 0x558   :  { %2287 = vmatpush1.bf16.msra.mxu1 %v3207_v1  ;;  %v1627_v1 = vrot.slane %v4244_v29, %v1626_v63 }
 0x559   :  { %2288 = vmatprep.subr.bf16.mxu1 %v3212_v2 }
 0x55c   :  { %2289 = vmatpush1.bf16.msra.mxu1 %v3210_v3 }
 0x55d   :  { %2290 = vmatprep.subr.bf16.mxu1 %v3215_v4 }
 0x560   :  { %2291 = vmatpush1.bf16.msra.mxu1 %v3213_v5 }
 0x561   :  { %2292 = vmatprep.subr.bf16.mxu1 %v3218_v57 }
 0x564   :  { %2293 = vmatpush1.bf16.msra.mxu1 %v3216_v6 }
 0x565   :  { %2294 = vmatprep.subr.bf16.mxu1 %v3221_v7 }
 0x568   :  { %2295 = vmatpush1.bf16.msra.mxu1 %v3219_v8 }
 0x569   :  { %2768 = vmatprep.subr.bf16.mxu1 %v3222_v9 }
 0x56b   :  { %2297 = vmatmul.mubr.bf16.vlgmr.msra.gmra.mrb[20].mxu1 %v4092_v42 }
 0x56c   :  { %2769 = vmatpush3.bf16.msra.mxu1 %v3223_v10  ;;  %2378 = vmatprep.mubr.bf16.mxu1 %v4087_v40 }
 0x56d   :  { %2770 = vmatprep.subr.bf16.mxu1 %v3224_v11 }
 0x570   :  { %2771 = vmatpush3.bf16.msra.mxu1 %v3225_v12 }
 0x571   :  { %2772 = vmatprep.subr.bf16.mxu1 %v3226_v15 }
 0x574   :  { %2773 = vmatpush3.bf16.msra.mxu1 %v3227_v17  ;;  %v1638_v17 = vsub.s32 6, %v3749_v13 }
 0x575   :  { %2774 = vmatprep.subr.bf16.mxu1 %v3228_v18 }
 0x578   :  { %2775 = vmatpush3.bf16.msra.mxu1 %v3229_v19 }
 0x579   :  { %2776 = vmatprep.subr.bf16.mxu1 %v3230_v20  ;;  %v1639_v20 = vrot.slane %v4244_v29, %v1638_v17 }
 0x57c   :  { %2777 = vmatpush3.bf16.msra.mxu1 %v3231_v21 }
 0x57d   :  { %2778 = vmatprep.subr.bf16.mxu1 %v3232_v22 }
 0x580   :  { %2779 = vmatpush3.bf16.msra.mxu1 %v3233_v23 }
 0x581   :  { %2780 = vmatprep.subr.bf16.mxu1 %v3234_v24 }
 0x584   :  { %2781 = vmatpush3.bf16.msra.mxu1 %v3235_v25 }
 0x585   :  { %2782 = vmatprep.subr.bf16.mxu1 %v3236_v26 }
 0x588   :  { %2783 = vmatpush3.bf16.msra.mxu1 %v3237_v27 }
 0x58b   :  { %2379 = vmatmul.mubr.bf16.vlgmr.msra.gmra.mrb[24].mxu1 %v4092_v42 }
 0x5fe   :  { %v2257_v35 = vpop.f32.mrb[16].mxu1  ;;  %v2339_v36 = vpop.f32.mrb[4].mxu0 }
 0x5ff   :  { %v2258_v37 = vadd.f32 %v2257_v35, %v1615_v31  ;;  %v2340_v38 = vadd.f32 %v2339_v36, %v1631_v32  ;;  %v2259_v39 = vpop.f32.mrb[17].mxu1  ;;  %v2341_v40 = vpop.f32.mrb[5].mxu0 }
 0x600   :  { %v2260_v41 = vadd.f32 %v2259_v39, %v1619_v33  ;;  %v2342_v42 = vadd.f32 %v2341_v40, %v1635_v34  ;;  %v2261_v43 = vpop.f32.mrb[18].mxu1  ;;  %v2343_v44 = vpop.f32.mrb[6].mxu0 }
 0x601   :  { %v2721_v45 = vmul.f32 -1.442695, %v2258_v37  ;;  %v2725_v46 = vmul.f32 -1.442695, %v2340_v38  ;;  %v2262_v14 = vpop.f32.mrb[19].mxu1  ;;  %v2344_v47 = vpop.f32.mrb[7].mxu0 }
 0x602   :  { %v2722_v48 = vmul.f32 -1.442695, %v2260_v41  ;;  %v2726_v49 = vmul.f32 -1.442695, %v2342_v42 }
 0x603   :  { %3238 = vpow2.f32 %v2721_v45 }
 0x604   :  { %3240 = vpow2.f32 %v2725_v46 }
 0x605   :  { %3242 = vpow2.f32 %v2722_v48 }
 0x606   :  { %3244 = vpow2.f32 %v2726_v49 }
 0x60d   :  { %v3239_v16 = vpop.eup %3238 }
 0x60e   :  { %v3241_v50 = vpop.eup %3240  ;;  %v2407_v51 = vadd.f32 1.0, %v3239_v16 }
 0x60f   :  { %v3243_v52 = vpop.eup %3242  ;;  %v2411_v53 = vadd.f32 1.0, %v3241_v50 }
 0x610   :  { %v3245_v54 = vpop.eup %3244  ;;  %3246 = vrcp.f32 %v2407_v51  ;;  %v2408_v55 = vadd.f32 1.0, %v3243_v52 }
 0x611   :  { %3248 = vrcp.f32 %v2411_v53  ;;  %v2412_v56 = vadd.f32 1.0, %v3245_v54 }
 0x612   :  { %3250 = vrcp.f32 %v2408_v55 }
 0x613   :  { %3252 = vrcp.f32 %v2412_v56 }
 0x61a   :  { %v3247_v58 = vpop.eup %3246 }
 0x61b   :  { %v3249_v59 = vpop.eup %3248  ;;  %2428 = vst [vmem:[%s4293_s13] sm:$0xff] %v3247_v58 }
 0x61c   :  { %v3251_v60 = vpop.eup %3250  ;;  %2432 = vst [vmem:[%s4293_s13 + $0x20] sm:$0xff] %v3249_v59 }
 0x61d   :  { %v3253_v61 = vpop.eup %3252  ;;  %2429 = vst [vmem:[%s4293_s13 + $0x8] sm:$0xff] %v3251_v60 }
 0x61e   :  { %2433 = vst [vmem:[%s4293_s13 + $0x28] sm:$0xff] %v3253_v61 }
 0x63e   :  { %v2298_v2 = vpop.f32.mrb[20].mxu1 }
 0x63f   :  { %v2299_v3 = vadd.f32 %v2298_v2, %v1623_v0  ;;  %v2300_v4 = vpop.f32.mrb[21].mxu1 }
 0x640   :  { %v2301_v5 = vadd.f32 %v2300_v4, %v1627_v1  ;;  %v2302_v57 = vpop.f32.mrb[22].mxu1 }
 0x641   :  { %v2723_v6 = vmul.f32 -1.442695, %v2299_v3  ;;  %v2303_v7 = vpop.f32.mrb[23].mxu1 }
 0x642   :  { %v2724_v8 = vmul.f32 -1.442695, %v2301_v5 }
 0x643   :  { %3254 = vpow2.f32 %v2723_v6 }
 0x644   :  { %3256 = vpow2.f32 %v2724_v8 }
 0x64d   :  { %v3255_v9 = vpop.eup %3254 }
 0x64e   :  { %v3257_v10 = vpop.eup %3256  ;;  %v2409_v11 = vadd.f32 1.0, %v3255_v9 }
 0x64f   :  { %v2410_v12 = vadd.f32 1.0, %v3257_v10 }
 0x650   :  { %3258 = vrcp.f32 %v2409_v11 }
 0x651   :  { %3260 = vrcp.f32 %v2410_v12 }
 0x65a   :  { %v3259_v15 = vpop.eup %3258 }
 0x65b   :  { %v3261_v18 = vpop.eup %3260  ;;  %2430 = vst [vmem:[%s4293_s13 + $0x10] sm:$0xff] %v3259_v15 }
 0x65c   :  { %2431 = vst [vmem:[%s4293_s13 + $0x18] sm:$0xff] %v3261_v18 }
 0x65e   :  { %v2784_v19 = vpop.f32.mrb[24].mxu1 }
 0x65f   :  { %v2785_v21 = vpop.f32.mrb[25].mxu1 }
 0x660   :  { %v2786_v22 = vadd.f32 %v2785_v21, %v2784_v19  ;;  %v2787_v23 = vpop.f32.mrb[26].mxu1 }
 0x661   :  { %v2788_v24 = vpop.f32.mrb[27].mxu1 }
 0x662   :  { %v2381_v25 = vadd.f32 %v2786_v22, %v1639_v20 }
 0x664   :  { %v2727_v26 = vmul.f32 -1.442695, %v2381_v25 }
 0x666   :  { %3262 = vpow2.f32 %v2727_v26 }
 0x670   :  { %v3263_v13 = vpop.eup %3262 }
 0x671   :  { %v2413_v27 = vadd.f32 1.0, %v3263_v13 }
 0x673   :  { %3264 = vrcp.f32 %v2413_v27 }
 0x67d   :  { %v3265_v28 = vpop.eup %3264 }
 0x67e   :  { %2434 = vst [vmem:[%s4293_s13 + $0x30] sm:$0xff] %v3265_v28 }

</bundles_post_ra>
